<compile_context>
chip_gen: v6e
topology: v6e:2x2x1
jax: 0.10.0
libtpu: 0.0.40
codegen_flags: <defaults>
</compile_context>

<pallas_src>
import functools
import math

import jax
import jax.numpy as jnp
from jax.experimental import pallas as pl
from jax.experimental.pallas import tpu as pltpu

_APPROX_SOFTMAX_RECIP = True  # EUP approx reciprocal in softmax denom (inference)


def _vmem_limit_bytes():
    """Generation-aware scoped-VMEM budget (v7x: 64 MiB/TC; v5e/v6e: 128 MiB)."""
    try:
        cap = pltpu.get_tpu_info().vmem_capacity_bytes
    except Exception:  # pragma: no cover - conservative fallback
        cap = 128 * 1024 * 1024
    return int(min(cap * 3 // 4, 100 * 1024 * 1024))


def _pick_ffn_tile(ffn_units):
    """K-tile width for the FFN hidden dim (prefer 256-multiples for v6e/v7x MXU)."""
    for t in (512, 256, 128):
        if ffn_units % t == 0:
            return t
    return ffn_units  # tiny / irregular sizes: single full tile


# ----------------------------------------------------------------------------------
# Fused kernels
# ----------------------------------------------------------------------------------
def _mha_add_ln_kernel(*refs, num_heads, scale, causal, has_mask):
    """One batch element: MHA (q from xq, k/v from xkv) + residual + LayerNorm."""
    if has_mask:
        (xq_ref, xkv_ref, wq_ref, bq_ref, wkv_ref, bkv_ref,
         wo_ref, bo_ref, mask_ref, g_ref, beta_ref, o_ref) = refs
    else:
        (xq_ref, xkv_ref, wq_ref, bq_ref, wkv_ref, bkv_ref,
         wo_ref, bo_ref, g_ref, beta_ref, o_ref) = refs
        mask_ref = None

    xq = xq_ref[0]                        # (Sq, D)  query / residual input, f32
    xkv = xkv_ref[0]                      # (Skv, D) key/value input, f32
    sq, d = xq.shape
    skv = xkv.shape[0]
    dh = d // num_heads
    bf16 = jnp.bfloat16

    # fused projections (bf16 MXU operands, f32 accumulation);
    # 1/sqrt(depth) folded into q here, not into the logits.
    q = (jnp.dot(xq.astype(bf16), wq_ref[...],
                 preferred_element_type=jnp.float32) + bq_ref[...]) * scale  # (Sq, D)
    kv = jnp.dot(xkv.astype(bf16), wkv_ref[...],
                 preferred_element_type=jnp.float32) + bkv_ref[...]          # (Skv, 2D)

    # additive mask bias: causal mask generated in-kernel (no HBM/VMEM traffic),
    # data-dependent padding mask comes from an input ref.
    if causal:
        rows = jax.lax.broadcasted_iota(jnp.int32, (sq, skv), 0)
        cols = jax.lax.broadcasted_iota(jnp.int32, (sq, skv), 1)
        bias = jnp.where(cols > rows, jnp.float32(-1e9), jnp.float32(0.0))
    elif has_mask:
        bias = mask_ref[...] * jnp.float32(-1e9)
    else:
        bias = None

    # per-head attention, statically unrolled; heads are lane slices of q / kv.
    head_outs = []
    for h in range(num_heads):
        lo = h * dh
        qh = q[:, lo:lo + dh].astype(bf16)            # (Sq, dh)
        kh = kv[:, lo:lo + dh].astype(bf16)           # (Skv, dh)
        vh = kv[:, d + lo:d + lo + dh].astype(bf16)   # (Skv, dh)
        # q @ k^T without materializing a transpose of k
        logits = jax.lax.dot_general(
            qh, kh, (((1,), (1,)), ((), ())),
            preferred_element_type=jnp.float32)       # (Sq, Skv)
        if bias is not None:
            logits = logits + bias
        logits = logits - jnp.max(logits, axis=-1, keepdims=True)
        p = jnp.exp(logits)
        denom = jnp.sum(p, axis=-1, keepdims=True)
        if _APPROX_SOFTMAX_RECIP:
            p = p * pl.reciprocal(denom, approx=True)
        else:
            p = p / denom
        head_outs.append(jnp.dot(p.astype(bf16), vh,
                                 preferred_element_type=jnp.float32))  # (Sq, dh)

    # merge heads lane-contiguously, then ONE full-D output projection on the MXU.
    attn = jnp.concatenate(head_outs, axis=-1)                          # (Sq, D)
    proj = jnp.dot(attn.astype(bf16), wo_ref[...],
                   preferred_element_type=jnp.float32) + bo_ref[...]    # (Sq, D)

    # residual add + LayerNorm (eps = 1e-5, PyTorch default), all f32
    z = xq + proj
    mean = jnp.mean(z, axis=-1, keepdims=True)
    var = jnp.mean(jnp.square(z - mean), axis=-1, keepdims=True)
    o_ref[0] = (z - mean) * jax.lax.rsqrt(var + 1e-5) * g_ref[...] + beta_ref[...]


def _ffn_add_ln_kernel(x_ref, w1_ref, b1_ref, w2_ref, b2_ref, g_ref, beta_ref,
                       o_ref, acc_ref):
    """One batch element, K-tiled over ffn_units:
       acc += relu(x @ w1[:, k] + b1[k]) @ w2[k, :]; finalize with residual + LN."""
    k = pl.program_id(1)
    bf16 = jnp.bfloat16

    @pl.when(k == 0)
    def _():
        acc_ref[...] = jnp.zeros_like(acc_ref)

    x = x_ref[0]                                                         # (S, D) f32
    h = jnp.dot(x.astype(bf16), w1_ref[...],
                preferred_element_type=jnp.float32) + b1_ref[...]        # (S, tf)
    h = jnp.maximum(h, 0.0)
    acc_ref[...] += jnp.dot(h.astype(bf16), w2_ref[...],
                            preferred_element_type=jnp.float32)          # (S, D)

    @pl.when(k == pl.num_programs(1) - 1)
    def _():
        z = x + acc_ref[...] + b2_ref[...]
        mean = jnp.mean(z, axis=-1, keepdims=True)
        var = jnp.mean(jnp.square(z - mean), axis=-1, keepdims=True)
        o_ref[0] = (z - mean) * jax.lax.rsqrt(var + 1e-5) * g_ref[...] + beta_ref[...]


# ----------------------------------------------------------------------------------
# pallas_call wrappers (grid over batch; weights stay VMEM-resident per step)
# ----------------------------------------------------------------------------------
def mha_add_layernorm(xq, xkv, p, ln_g, ln_b, num_heads, *, mask=None, causal=False):
    B, Sq, D = xq.shape
    Skv = xkv.shape[1]
    scale = 1.0 / math.sqrt(D // num_heads)
    has_mask = (mask is not None) and (not causal)
    kernel = functools.partial(_mha_add_ln_kernel, num_heads=num_heads,
                               scale=scale, causal=causal, has_mask=has_mask)
    res2 = lambda b: (0, 0)  # resident block: same tile every grid step

    in_specs = [
        pl.BlockSpec((1, Sq, D), lambda b: (b, 0, 0)),    # xq (query / residual)
        pl.BlockSpec((1, Skv, D), lambda b: (b, 0, 0)),   # xkv (key/value source)
        pl.BlockSpec((D, D), res2),                       # wq   (bf16)
        pl.BlockSpec((1, D), res2),                       # bq   (f32)
        pl.BlockSpec((D, 2 * D), res2),                   # wkv  (bf16, fused wk|wv)
        pl.BlockSpec((1, 2 * D), res2),                   # bkv  (f32)
        pl.BlockSpec((D, D), res2),                       # wo   (bf16)
        pl.BlockSpec((1, D), res2),                       # bo   (f32)
    ]
    args = [xq, xkv, p["wq"], p["bq"], p["wkv"], p["bkv"], p["wo"], p["bo"]]
    if has_mask:
        in_specs.append(pl.BlockSpec((Sq, Skv), res2))    # padding mask (0/1)
        args.append(mask)
    in_specs += [pl.BlockSpec((1, D), res2),              # LayerNorm gamma
                 pl.BlockSpec((1, D), res2)]              # LayerNorm beta
    args += [ln_g, ln_b]

    return pl.pallas_call(
        kernel,
        grid=(B,),
        in_specs=in_specs,
        out_specs=pl.BlockSpec((1, Sq, D), lambda b: (b, 0, 0)),
        out_shape=jax.ShapeDtypeStruct((B, Sq, D), jnp.float32),
        compiler_params=pltpu.CompilerParams(
            dimension_semantics=("parallel",),
            vmem_limit_bytes=_vmem_limit_bytes()),
    )(*args)


def ffn_add_layernorm(x, w1, b1, w2, b2, ln_g, ln_b):
    B, S, D = x.shape
    F = w1.shape[1]
    tf = _pick_ffn_tile(F)
    kf = F // tf
    res = lambda b, k: (0, 0)
    return pl.pallas_call(
        _ffn_add_ln_kernel,
        grid=(B, kf),
        in_specs=[
            pl.BlockSpec((1, S, D), lambda b, k: (b, 0, 0)),   # x (residual input)
            pl.BlockSpec((D, tf), lambda b, k: (0, k)),        # w1 K-tile (bf16)
            pl.BlockSpec((1, tf), lambda b, k: (0, k)),        # b1 K-tile (f32)
            pl.BlockSpec((tf, D), lambda b, k: (k, 0)),        # w2 K-tile (bf16)
            pl.BlockSpec((1, D), res),                         # b2
            pl.BlockSpec((1, D), res),                         # LayerNorm gamma
            pl.BlockSpec((1, D), res),                         # LayerNorm beta
        ],
        out_specs=pl.BlockSpec((1, S, D), lambda b, k: (b, 0, 0)),
        out_shape=jax.ShapeDtypeStruct((B, S, D), jnp.float32),
        scratch_shapes=[pltpu.VMEM((S, D), jnp.float32)],       # f32 accumulator
        compiler_params=pltpu.CompilerParams(
            dimension_semantics=("parallel", "arbitrary"),
            vmem_limit_bytes=_vmem_limit_bytes()),
    )(x, w1, b1, w2, b2, ln_g, ln_b)


# ----------------------------------------------------------------------------------
# DecoderLayer forward
# ----------------------------------------------------------------------------------
def decoder_layer_forward(params, x, enc_output, look_ahead_mask, padding_mask,
                          num_heads, *, self_attn_is_causal=True):
    # When self_attn_is_causal, the standard strictly-upper-triangular causal mask
    # is regenerated in-kernel via iota (look_ahead_mask array is not DMA'd);
    # pass self_attn_is_causal=False to use an arbitrary look_ahead_mask array.
    la_mask = None if self_attn_is_causal else look_ahead_mask

    out1 = mha_add_layernorm(x, x, params["mha1"],
                             params["ln1_g"], params["ln1_b"], num_heads,
                             mask=la_mask, causal=self_attn_is_causal)
    out2 = mha_add_layernorm(out1, enc_output, params["mha2"],
                             params["ln2_g"], params["ln2_b"], num_heads,
                             mask=padding_mask, causal=False)
    out3 = ffn_add_layernorm(out2, params["ffn_w1"], params["ffn_b1"],
                             params["ffn_w2"], params["ffn_b2"],
                             params["ln3_g"], params["ln3_b"])
    return out3


# ----------------------------------------------------------------------------------
# Pure-JAX reference (mirrors the module math and the kernel's bf16/f32 precision)
# ----------------------------------------------------------------------------------
def _reference_forward(params, x, enc_output, la_mask, pad_mask, num_heads):
    bf = jnp.bfloat16

    def bdot(a, b):
        return jnp.dot(a.astype(bf), b.astype(bf),
                       preferred_element_type=jnp.float32)

    def mha(p, q_in, kv_in, mask):
        B, Sq, D = q_in.shape
        Skv = kv_in.shape[1]
        dh = D // num_heads
        scale = 1.0 / math.sqrt(dh)
        q = (bdot(q_in, p["wq"]) + p["bq"]) * scale
        kvp = bdot(kv_in, p["wkv"]) + p["bkv"]
        k, v = kvp[..., :D], kvp[..., D:]
        split = lambda t, S: t.reshape(B, S, num_heads, dh).transpose(0, 2, 1, 3)
        qh, kh, vh = split(q, Sq), split(k, Skv), split(v, Skv)
        logits = jnp.einsum('bhqd,bhkd->bhqk', qh.astype(bf), kh.astype(bf),
                            preferred_element_type=jnp.float32)
        if mask is not None:
            logits = logits + mask * (-1e9)
        w = jax.nn.softmax(logits, axis=-1)
        o = jnp.einsum('bhqk,bhkd->bhqd', w.astype(bf), vh.astype(bf),
                       preferred_element_type=jnp.float32)
        o = o.transpose(0, 2, 1, 3).reshape(B, Sq, D)
        return bdot(o, p["wo"]) + p["bo"]

    def ln(z, g, b):
        m = z.mean(-1, keepdims=True)
        v = jnp.square(z - m).mean(-1, keepdims=True)
        return (z - m) * jax.lax.rsqrt(v + 1e-5) * g + b

    out1 = ln(x + mha(params["mha1"], x, x, la_mask),
              params["ln1_g"], params["ln1_b"])
    out2 = ln(out1 + mha(params["mha2"], out1, enc_output, pad_mask),
              params["ln2_g"], params["ln2_b"])
    h = jnp.maximum(bdot(out2, params["ffn_w1"]) + params["ffn_b1"], 0.0)
    ffn = bdot(h, params["ffn_w2"]) + params["ffn_b2"]
    return ln(out2 + ffn, params["ln3_g"], params["ln3_b"])


# ----------------------------------------------------------------------------------
# Deterministic parameter init (mirrors torch.nn.Linear default U(-1/sqrt(fan_in),.))
# Weights stored in bf16 (MXU operands); biases / LayerNorm params in f32.
# ----------------------------------------------------------------------------------
def init_linear(key, din, dout):
    k1, k2 = jax.random.split(key)
    lim = 1.0 / math.sqrt(din)
    w = jax.random.uniform(k1, (din, dout), jnp.float32, -lim, lim).astype(jnp.bfloat16)
    b = jax.random.uniform(k2, (1, dout), jnp.float32, -lim, lim)
    return w, b


def init_mha(key, d_model):
    ks = jax.random.split(key, 4)
    wq, bq = init_linear(ks[0], d_model, d_model)
    wk, bk = init_linear(ks[1], d_model, d_model)
    wv, bv = init_linear(ks[2], d_model, d_model)
    wo, bo = init_linear(ks[3], d_model, d_model)
    return dict(wq=wq, bq=bq,
                wkv=jnp.concatenate([wk, wv], axis=1),   # fused k|v projection (bf16)
                bkv=jnp.concatenate([bk, bv], axis=1),
                wo=wo, bo=bo)


def init_params(key, d_model, ffn_units):
    ks = jax.random.split(key, 4)
    w1, b1 = init_linear(ks[2], d_model, ffn_units)
    w2, b2 = init_linear(ks[3], ffn_units, d_model)
    ones = jnp.ones((1, d_model), jnp.float32)
    zeros = jnp.zeros((1, d_model), jnp.float32)
    return dict(
        mha1=init_mha(ks[0], d_model),
        mha2=init_mha(ks[1], d_model),
        ffn_w1=w1, ffn_b1=b1, ffn_w2=w2, ffn_b2=b2,
        ln1_g=ones, ln1_b=zeros,
        ln2_g=ones, ln2_b=zeros,
        ln3_g=ones, ln3_b=zeros,
    )


if __name__ == "__main__":
    B, S, D, H, FFN = 2, 8, 32, 4, 64
    dropout_rate = 0.1  # dropout is identity in eval mode

    key = jax.random.PRNGKey(0)
    kp, kx, ke = jax.random.split(key, 3)
    params = init_params(kp, D, FFN)

    x = jax.random.normal(kx, (B, S, D), jnp.float32)
    enc_output = jax.random.normal(ke, (B, S, D), jnp.float32)

    # causal look-ahead mask: 1 where attention is disallowed (strictly upper tri)
    look_ahead_mask = jnp.triu(jnp.ones((S, S), jnp.float32), k=1)
    # padding mask: no padding in this example
    padding_mask = jnp.zeros((S, S), jnp.float32)

    fwd = jax.jit(functools.partial(decoder_layer_forward, num_heads=H))
    out = fwd(params, x, enc_output, look_ahead_mask, padding_mask)
    jax.block_until_ready(out)
    assert out.shape == (B, S, D)

    # numerical sanity check vs a pure-JAX reference of the PyTorch module
    # (reference mirrors the kernel's bf16-operand / f32-accumulate precision)
    ref = _reference_forward(params, x, enc_output, look_ahead_mask, padding_mask, H)
    assert bool(jnp.allclose(out, ref, atol=2e-2, rtol=2e-2)), \
        "Pallas output mismatch vs reference"
    print("KERNEL_OK")
</pallas_src>

<mosaic_0001>
module attributes {stable_mosaic.version = 11 : i64} {
  func.func @_ffn_add_ln_kernel(%arg0: i32, %arg1: i32, %arg2: memref<1x8x32xf32, #tpu.memory_space<vmem>>, %arg3: memref<32x64xbf16, #tpu.memory_space<vmem>>, %arg4: memref<1x64xf32, #tpu.memory_space<vmem>>, %arg5: memref<64x32xbf16, #tpu.memory_space<vmem>>, %arg6: memref<1x32xf32, #tpu.memory_space<vmem>>, %arg7: memref<1x32xf32, #tpu.memory_space<vmem>>, %arg8: memref<1x32xf32, #tpu.memory_space<vmem>>, %arg9: memref<1x8x32xf32, #tpu.memory_space<vmem>>, %arg10: memref<8x32xf32, #tpu.memory_space<vmem>>) attributes {dimension_semantics = [#tpu.dimension_semantics<parallel>, #tpu.dimension_semantics<arbitrary>], iteration_bounds = array<i64: 2, 1>, scalar_prefetch = 0 : i64, scratch_operands = 1 : i64, tpu.core_type = #tpu.core_type<tc>, window_params = [{transform_indices = @transform_0, window_bounds = array<i64: 1, 8, 32>}, {transform_indices = @transform_1, window_bounds = array<i64: 32, 64>}, {transform_indices = @transform_2, window_bounds = array<i64: 1, 64>}, {transform_indices = @transform_3, window_bounds = array<i64: 64, 32>}, {pipeline_mode = #tpu.pipeline_mode<synchronous>, transform_indices = @transform_4, window_bounds = array<i64: 1, 32>}, {pipeline_mode = #tpu.pipeline_mode<synchronous>, transform_indices = @transform_5, window_bounds = array<i64: 1, 32>}, {pipeline_mode = #tpu.pipeline_mode<synchronous>, transform_indices = @transform_6, window_bounds = array<i64: 1, 32>}, {transform_indices = @transform_7, window_bounds = array<i64: 1, 8, 32>}]} {
    %c0_i32 = arith.constant 0 : i32
    %0 = arith.cmpi eq, %arg1, %c0_i32 : i32
    %1 = arith.extui %0 : i1 to i32
    %c0_i32_0 = arith.constant 0 : i32
    %2 = arith.cmpi ne, %1, %c0_i32_0 : i32
    scf.if %2 {
      %cst_17 = arith.constant 0.000000e+00 : f32
      %22 = vector.broadcast %cst_17 : f32 to vector<8x32xf32>
      %c0_18 = arith.constant 0 : index
      %c0_19 = arith.constant 0 : index
      %23 = vector.load %arg10[%c0_18, %c0_19] : memref<8x32xf32, #tpu.memory_space<vmem>>, vector<8x32xf32>
      tpu.vector_store %arg10[%c0_18, %c0_19], %22 {strides = array<i32>} : memref<8x32xf32, #tpu.memory_space<vmem>>, vector<8x32xf32>,
    } else {
    }
    %c0 = arith.constant 0 : index
    %c0_1 = arith.constant 0 : index
    %c0_2 = arith.constant 0 : index
    %3 = vector.load %arg2[%c0, %c0_1, %c0_2] : memref<1x8x32xf32, #tpu.memory_space<vmem>>, vector<1x8x32xf32>
    %4 = vector.shape_cast %3 : vector<1x8x32xf32> to vector<8x32xf32>
    %5 = arith.truncf %4 : vector<8x32xf32> to vector<8x32xbf16>
    %c0_3 = arith.constant 0 : index
    %c0_4 = arith.constant 0 : index
    %6 = vector.load %arg3[%c0_3, %c0_4] : memref<32x64xbf16, #tpu.memory_space<vmem>>, vector<32x64xbf16>
    %cst = arith.constant dense<0.000000e+00> : vector<8x64xf32>
    %7 = tpu.matmul %5, %6, %cst {dimension_numbers = #tpu.dot_dimension_numbers<[1], [0], [0], [1], [0, 0, 1, 1], [], []>} : vector<8x32xbf16>, vector<32x64xbf16>, vector<8x64xf32> -> vector<8x64xf32>
    %c0_5 = arith.constant 0 : index
    %c0_6 = arith.constant 0 : index
    %8 = vector.load %arg4[%c0_5, %c0_6] : memref<1x64xf32, #tpu.memory_space<vmem>>, vector<1x64xf32>
    %9 = vector.broadcast %8 : vector<1x64xf32> to vector<8x64xf32>
    %10 = arith.addf %7, %9 : vector<8x64xf32>
    %cst_7 = arith.constant 0.000000e+00 : f32
    %11 = vector.broadcast %cst_7 : f32 to vector<8x64xf32>
    %12 = arith.maximumf %10, %11 : vector<8x64xf32>
    %c0_8 = arith.constant 0 : index
    %c0_9 = arith.constant 0 : index
    %13 = vector.load %arg10[%c0_8, %c0_9] : memref<8x32xf32, #tpu.memory_space<vmem>>, vector<8x32xf32>
    %14 = arith.truncf %12 : vector<8x64xf32> to vector<8x64xbf16>
    %c0_10 = arith.constant 0 : index
    %c0_11 = arith.constant 0 : index
    %15 = vector.load %arg5[%c0_10, %c0_11] : memref<64x32xbf16, #tpu.memory_space<vmem>>, vector<64x32xbf16>
    %cst_12 = arith.constant dense<0.000000e+00> : vector<8x32xf32>
    %16 = tpu.matmul %14, %15, %cst_12 {dimension_numbers = #tpu.dot_dimension_numbers<[1], [0], [0], [1], [0, 0, 1, 1], [], []>} : vector<8x64xbf16>, vector<64x32xbf16>, vector<8x32xf32> -> vector<8x32xf32>
    %17 = arith.addf %13, %16 : vector<8x32xf32>
    %c0_13 = arith.constant 0 : index
    %c0_14 = arith.constant 0 : index
    %18 = vector.load %arg10[%c0_13, %c0_14] : memref<8x32xf32, #tpu.memory_space<vmem>>, vector<8x32xf32>
    tpu.vector_store %arg10[%c0_13, %c0_14], %17 {strides = array<i32>} : memref<8x32xf32, #tpu.memory_space<vmem>>, vector<8x32xf32>,
    %c0_i32_15 = arith.constant 0 : i32
    %19 = arith.cmpi eq, %arg1, %c0_i32_15 : i32
    %20 = arith.extui %19 : i1 to i32
    %c0_i32_16 = arith.constant 0 : i32
    %21 = arith.cmpi ne, %20, %c0_i32_16 : i32
    scf.if %21 {
      %c0_17 = arith.constant 0 : index
      %c0_18 = arith.constant 0 : index
      %22 = vector.load %arg10[%c0_17, %c0_18] : memref<8x32xf32, #tpu.memory_space<vmem>>, vector<8x32xf32>
      %23 = arith.addf %4, %22 : vector<8x32xf32>
      %c0_19 = arith.constant 0 : index
      %c0_20 = arith.constant 0 : index
      %24 = vector.load %arg6[%c0_19, %c0_20] : memref<1x32xf32, #tpu.memory_space<vmem>>, vector<1x32xf32>
      %25 = vector.broadcast %24 : vector<1x32xf32> to vector<8x32xf32>
      %26 = arith.addf %23, %25 : vector<8x32xf32>
      %cst_21 = arith.constant dense<0.000000e+00> : vector<8xf32>
      %27 = vector.multi_reduction <add>, %26, %cst_21 [1] : vector<8x32xf32> to vector<8xf32>
      %28 = vector.shape_cast %27 : vector<8xf32> to vector<8x1xf32>
      %cst_22 = arith.constant 3.200000e+01 : f32
      %29 = vector.broadcast %cst_22 : f32 to vector<8x1xf32>
      %30 = arith.divf %28, %29 : vector<8x1xf32>
      %31 = vector.broadcast %30 : vector<8x1xf32> to vector<8x32xf32>
      %32 = arith.subf %26, %31 : vector<8x32xf32>
      %33 = arith.mulf %32, %32 : vector<8x32xf32>
      %cst_23 = arith.constant dense<0.000000e+00> : vector<8xf32>
      %34 = vector.multi_reduction <add>, %33, %cst_23 [1] : vector<8x32xf32> to vector<8xf32>
      %35 = vector.shape_cast %34 : vector<8xf32> to vector<8x1xf32>
      %cst_24 = arith.constant 3.200000e+01 : f32
      %36 = vector.broadcast %cst_24 : f32 to vector<8x1xf32>
      %37 = arith.divf %35, %36 : vector<8x1xf32>
      %38 = vector.broadcast %30 : vector<8x1xf32> to vector<8x32xf32>
      %39 = arith.subf %26, %38 : vector<8x32xf32>
      %cst_25 = arith.constant 9.99999974E-6 : f32
      %40 = vector.broadcast %cst_25 : f32 to vector<8x1xf32>
      %41 = arith.addf %37, %40 : vector<8x1xf32>
      %42 = math.rsqrt %41 : vector<8x1xf32>
      %43 = vector.broadcast %42 : vector<8x1xf32> to vector<8x32xf32>
      %44 = arith.mulf %39, %43 : vector<8x32xf32>
      %c0_26 = arith.constant 0 : index
      %c0_27 = arith.constant 0 : index
      %45 = vector.load %arg7[%c0_26, %c0_27] : memref<1x32xf32, #tpu.memory_space<vmem>>, vector<1x32xf32>
      %46 = vector.broadcast %45 : vector<1x32xf32> to vector<8x32xf32>
      %47 = arith.mulf %44, %46 : vector<8x32xf32>
      %c0_28 = arith.constant 0 : index
      %c0_29 = arith.constant 0 : index
      %48 = vector.load %arg8[%c0_28, %c0_29] : memref<1x32xf32, #tpu.memory_space<vmem>>, vector<1x32xf32>
      %49 = vector.broadcast %48 : vector<1x32xf32> to vector<8x32xf32>
      %50 = arith.addf %47, %49 : vector<8x32xf32>
      %c0_30 = arith.constant 0 : index
      %c0_31 = arith.constant 0 : index
      %c0_32 = arith.constant 0 : index
      %51 = vector.load %arg9[%c0_30, %c0_31, %c0_32] : memref<1x8x32xf32, #tpu.memory_space<vmem>>, vector<1x8x32xf32>
      %52 = vector.shape_cast %51 : vector<1x8x32xf32> to vector<8x32xf32>
      %53 = vector.shape_cast %50 : vector<8x32xf32> to vector<1x8x32xf32>
      tpu.vector_store %arg9[%c0_30, %c0_31, %c0_32], %53 {strides = array<i32>} : memref<1x8x32xf32, #tpu.memory_space<vmem>>, vector<1x8x32xf32>,
    } else {
    }
    return
  }
  func.func @transform_0(%arg0: i32, %arg1: i32) -> (i32, i32, i32) {
    %c0_i32 = arith.constant 0 : i32
    %c0_i32_0 = arith.constant 0 : i32
    %c0_i32_1 = arith.constant 0 : i32
    return %arg0, %c0_i32, %c0_i32_0 : i32, i32, i32
  }
  func.func @transform_1(%arg0: i32, %arg1: i32) -> (i32, i32) {
    %c0_i32 = arith.constant 0 : i32
    %c0_i32_0 = arith.constant 0 : i32
    return %c0_i32, %arg1 : i32, i32
  }
  func.func @transform_2(%arg0: i32, %arg1: i32) -> (i32, i32) {
    %c0_i32 = arith.constant 0 : i32
    %c0_i32_0 = arith.constant 0 : i32
    return %c0_i32, %arg1 : i32, i32
  }
  func.func @transform_3(%arg0: i32, %arg1: i32) -> (i32, i32) {
    %c0_i32 = arith.constant 0 : i32
    %c0_i32_0 = arith.constant 0 : i32
    return %arg1, %c0_i32 : i32, i32
  }
  func.func @transform_4(%arg0: i32, %arg1: i32) -> (i32, i32) {
    %c0_i32 = arith.constant 0 : i32
    %c0_i32_0 = arith.constant 0 : i32
    %c0_i32_1 = arith.constant 0 : i32
    return %c0_i32, %c0_i32_0 : i32, i32
  }
  func.func @transform_5(%arg0: i32, %arg1: i32) -> (i32, i32) {
    %c0_i32 = arith.constant 0 : i32
    %c0_i32_0 = arith.constant 0 : i32
    %c0_i32_1 = arith.constant 0 : i32
    return %c0_i32, %c0_i32_0 : i32, i32
  }
  func.func @transform_6(%arg0: i32, %arg1: i32) -> (i32, i32) {
    %c0_i32 = arith.constant 0 : i32
    %c0_i32_0 = arith.constant 0 : i32
    %c0_i32_1 = arith.constant 0 : i32
    return %c0_i32, %c0_i32_0 : i32, i32
  }
  func.func @transform_7(%arg0: i32, %arg1: i32) -> (i32, i32, i32) {
    %c0_i32 = arith.constant 0 : i32
    %c0_i32_0 = arith.constant 0 : i32
    %c0_i32_1 = arith.constant 0 : i32
    return %arg0, %c0_i32, %c0_i32_0 : i32, i32, i32
  }
}

module attributes {stable_mosaic.version = 11 : i64} {
  func.func @_mha_add_ln_kernel(%arg0: i32, %arg1: memref<1x8x32xf32, #tpu.memory_space<vmem>>, %arg2: memref<1x8x32xf32, #tpu.memory_space<vmem>>, %arg3: memref<32x32xbf16, #tpu.memory_space<vmem>>, %arg4: memref<1x32xf32, #tpu.memory_space<vmem>>, %arg5: memref<32x64xbf16, #tpu.memory_space<vmem>>, %arg6: memref<1x64xf32, #tpu.memory_space<vmem>>, %arg7: memref<32x32xbf16, #tpu.memory_space<vmem>>, %arg8: memref<1x32xf32, #tpu.memory_space<vmem>>, %arg9: memref<8x8xf32, #tpu.memory_space<vmem>>, %arg10: memref<1x32xf32, #tpu.memory_space<vmem>>, %arg11: memref<1x32xf32, #tpu.memory_space<vmem>>, %arg12: memref<1x8x32xf32, #tpu.memory_space<vmem>>) attributes {dimension_semantics = [#tpu.dimension_semantics<parallel>], iteration_bounds = array<i64: 2>, scalar_prefetch = 0 : i64, scratch_operands = 0 : i64, tpu.core_type = #tpu.core_type<tc>, window_params = [{transform_indices = @transform_0, window_bounds = array<i64: 1, 8, 32>}, {transform_indices = @transform_1, window_bounds = array<i64: 1, 8, 32>}, {pipeline_mode = #tpu.pipeline_mode<synchronous>, transform_indices = @transform_2, window_bounds = array<i64: 32, 32>}, {pipeline_mode = #tpu.pipeline_mode<synchronous>, transform_indices = @transform_3, window_bounds = array<i64: 1, 32>}, {pipeline_mode = #tpu.pipeline_mode<synchronous>, transform_indices = @transform_4, window_bounds = array<i64: 32, 64>}, {pipeline_mode = #tpu.pipeline_mode<synchronous>, transform_indices = @transform_5, window_bounds = array<i64: 1, 64>}, {pipeline_mode = #tpu.pipeline_mode<synchronous>, transform_indices = @transform_6, window_bounds = array<i64: 32, 32>}, {pipeline_mode = #tpu.pipeline_mode<synchronous>, transform_indices = @transform_7, window_bounds = array<i64: 1, 32>}, {pipeline_mode = #tpu.pipeline_mode<synchronous>, transform_indices = @transform_8, window_bounds = array<i64: 8, 8>}, {pipeline_mode = #tpu.pipeline_mode<synchronous>, transform_indices = @transform_9, window_bounds = array<i64: 1, 32>}, {pipeline_mode = #tpu.pipeline_mode<synchronous>, transform_indices = @transform_10, window_bounds = array<i64: 1, 32>}, {transform_indices = @transform_11, window_bounds = array<i64: 1, 8, 32>}]} {
    %c0 = arith.constant 0 : index
    %c0_0 = arith.constant 0 : index
    %c0_1 = arith.constant 0 : index
    %0 = vector.load %arg1[%c0, %c0_0, %c0_1] : memref<1x8x32xf32, #tpu.memory_space<vmem>>, vector<1x8x32xf32>
    %1 = vector.shape_cast %0 : vector<1x8x32xf32> to vector<8x32xf32>
    %c0_2 = arith.constant 0 : index
    %c0_3 = arith.constant 0 : index
    %c0_4 = arith.constant 0 : index
    %2 = vector.load %arg2[%c0_2, %c0_3, %c0_4] : memref<1x8x32xf32, #tpu.memory_space<vmem>>, vector<1x8x32xf32>
    %3 = vector.shape_cast %2 : vector<1x8x32xf32> to vector<8x32xf32>
    %4 = arith.truncf %1 : vector<8x32xf32> to vector<8x32xbf16>
    %c0_5 = arith.constant 0 : index
    %c0_6 = arith.constant 0 : index
    %5 = vector.load %arg3[%c0_5, %c0_6] : memref<32x32xbf16, #tpu.memory_space<vmem>>, vector<32x32xbf16>
    %cst = arith.constant dense<0.000000e+00> : vector<8x32xf32>
    %6 = tpu.matmul %4, %5, %cst {dimension_numbers = #tpu.dot_dimension_numbers<[1], [0], [0], [1], [0, 0, 1, 1], [], []>} : vector<8x32xbf16>, vector<32x32xbf16>, vector<8x32xf32> -> vector<8x32xf32>
    %c0_7 = arith.constant 0 : index
    %c0_8 = arith.constant 0 : index
    %7 = vector.load %arg4[%c0_7, %c0_8] : memref<1x32xf32, #tpu.memory_space<vmem>>, vector<1x32xf32>
    %8 = vector.broadcast %7 : vector<1x32xf32> to vector<8x32xf32>
    %9 = arith.addf %6, %8 : vector<8x32xf32>
    %cst_9 = arith.constant 0.353553385 : f32
    %10 = vector.broadcast %cst_9 : f32 to vector<8x32xf32>
    %11 = arith.mulf %9, %10 : vector<8x32xf32>
    %12 = arith.truncf %3 : vector<8x32xf32> to vector<8x32xbf16>
    %c0_10 = arith.constant 0 : index
    %c0_11 = arith.constant 0 : index
    %13 = vector.load %arg5[%c0_10, %c0_11] : memref<32x64xbf16, #tpu.memory_space<vmem>>, vector<32x64xbf16>
    %cst_12 = arith.constant dense<0.000000e+00> : vector<8x64xf32>
    %14 = tpu.matmul %12, %13, %cst_12 {dimension_numbers = #tpu.dot_dimension_numbers<[1], [0], [0], [1], [0, 0, 1, 1], [], []>} : vector<8x32xbf16>, vector<32x64xbf16>, vector<8x64xf32> -> vector<8x64xf32>
    %c0_13 = arith.constant 0 : index
    %c0_14 = arith.constant 0 : index
    %15 = vector.load %arg6[%c0_13, %c0_14] : memref<1x64xf32, #tpu.memory_space<vmem>>, vector<1x64xf32>
    %16 = vector.broadcast %15 : vector<1x64xf32> to vector<8x64xf32>
    %17 = arith.addf %14, %16 : vector<8x64xf32>
    %c0_15 = arith.constant 0 : index
    %c0_16 = arith.constant 0 : index
    %18 = vector.load %arg9[%c0_15, %c0_16] : memref<8x8xf32, #tpu.memory_space<vmem>>, vector<8x8xf32>
    %cst_17 = arith.constant -1.000000e+09 : f32
    %19 = vector.broadcast %cst_17 : f32 to vector<8x8xf32>
    %20 = arith.mulf %18, %19 : vector<8x8xf32>
    %21 = vector.extract_strided_slice %11 {offsets = [0, 0], sizes = [8, 8], strides = [1, 1]} : vector<8x32xf32> to vector<8x8xf32>
    %22 = arith.truncf %21 : vector<8x8xf32> to vector<8x8xbf16>
    %23 = vector.extract_strided_slice %17 {offsets = [0, 0], sizes = [8, 8], strides = [1, 1]} : vector<8x64xf32> to vector<8x8xf32>
    %24 = arith.truncf %23 : vector<8x8xf32> to vector<8x8xbf16>
    %25 = vector.extract_strided_slice %17 {offsets = [0, 32], sizes = [8, 8], strides = [1, 1]} : vector<8x64xf32> to vector<8x8xf32>
    %26 = arith.truncf %25 : vector<8x8xf32> to vector<8x8xbf16>
    %cst_18 = arith.constant dense<0.000000e+00> : vector<8x8xf32>
    %27 = tpu.matmul %22, %24, %cst_18 {dimension_numbers = #tpu.dot_dimension_numbers<[1], [1], [0], [0], [0, 0, 1, 0], [], []>} : vector<8x8xbf16>, vector<8x8xbf16>, vector<8x8xf32> -> vector<8x8xf32>
    %28 = arith.addf %27, %20 : vector<8x8xf32>
    %cst_19 = arith.constant dense<0xFF800000> : vector<8xf32>
    %29 = vector.multi_reduction <maximumf>, %28, %cst_19 [1] : vector<8x8xf32> to vector<8xf32>
    %30 = vector.shape_cast %29 : vector<8xf32> to vector<8x1xf32>
    %31 = vector.broadcast %30 : vector<8x1xf32> to vector<8x8xf32>
    %32 = arith.subf %28, %31 : vector<8x8xf32>
    %33 = math.exp %32 : vector<8x8xf32>
    %cst_20 = arith.constant dense<0.000000e+00> : vector<8xf32>
    %34 = vector.multi_reduction <add>, %33, %cst_20 [1] : vector<8x8xf32> to vector<8xf32>
    %35 = vector.shape_cast %34 : vector<8xf32> to vector<8x1xf32>
    %36 = tpu.reciprocal %35 {approx = true} : vector<8x1xf32> -> vector<8x1xf32>
    %37 = vector.broadcast %36 : vector<8x1xf32> to vector<8x8xf32>
    %38 = arith.mulf %33, %37 : vector<8x8xf32>
    %39 = arith.truncf %38 : vector<8x8xf32> to vector<8x8xbf16>
    %cst_21 = arith.constant dense<0.000000e+00> : vector<8x8xf32>
    %40 = tpu.matmul %39, %26, %cst_21 {dimension_numbers = #tpu.dot_dimension_numbers<[1], [0], [0], [1], [0, 0, 1, 1], [], []>} : vector<8x8xbf16>, vector<8x8xbf16>, vector<8x8xf32> -> vector<8x8xf32>
    %41 = vector.extract_strided_slice %11 {offsets = [0, 8], sizes = [8, 8], strides = [1, 1]} : vector<8x32xf32> to vector<8x8xf32>
    %42 = arith.truncf %41 : vector<8x8xf32> to vector<8x8xbf16>
    %43 = vector.extract_strided_slice %17 {offsets = [0, 8], sizes = [8, 8], strides = [1, 1]} : vector<8x64xf32> to vector<8x8xf32>
    %44 = arith.truncf %43 : vector<8x8xf32> to vector<8x8xbf16>
    %45 = vector.extract_strided_slice %17 {offsets = [0, 40], sizes = [8, 8], strides = [1, 1]} : vector<8x64xf32> to vector<8x8xf32>
    %46 = arith.truncf %45 : vector<8x8xf32> to vector<8x8xbf16>
    %cst_22 = arith.constant dense<0.000000e+00> : vector<8x8xf32>
    %47 = tpu.matmul %42, %44, %cst_22 {dimension_numbers = #tpu.dot_dimension_numbers<[1], [1], [0], [0], [0, 0, 1, 0], [], []>} : vector<8x8xbf16>, vector<8x8xbf16>, vector<8x8xf32> -> vector<8x8xf32>
    %48 = arith.addf %47, %20 : vector<8x8xf32>
    %cst_23 = arith.constant dense<0xFF800000> : vector<8xf32>
    %49 = vector.multi_reduction <maximumf>, %48, %cst_23 [1] : vector<8x8xf32> to vector<8xf32>
    %50 = vector.shape_cast %49 : vector<8xf32> to vector<8x1xf32>
    %51 = vector.broadcast %50 : vector<8x1xf32> to vector<8x8xf32>
    %52 = arith.subf %48, %51 : vector<8x8xf32>
    %53 = math.exp %52 : vector<8x8xf32>
    %cst_24 = arith.constant dense<0.000000e+00> : vector<8xf32>
    %54 = vector.multi_reduction <add>, %53, %cst_24 [1] : vector<8x8xf32> to vector<8xf32>
    %55 = vector.shape_cast %54 : vector<8xf32> to vector<8x1xf32>
    %56 = tpu.reciprocal %55 {approx = true} : vector<8x1xf32> -> vector<8x1xf32>
    %57 = vector.broadcast %56 : vector<8x1xf32> to vector<8x8xf32>
    %58 = arith.mulf %53, %57 : vector<8x8xf32>
    %59 = arith.truncf %58 : vector<8x8xf32> to vector<8x8xbf16>
    %cst_25 = arith.constant dense<0.000000e+00> : vector<8x8xf32>
    %60 = tpu.matmul %59, %46, %cst_25 {dimension_numbers = #tpu.dot_dimension_numbers<[1], [0], [0], [1], [0, 0, 1, 1], [], []>} : vector<8x8xbf16>, vector<8x8xbf16>, vector<8x8xf32> -> vector<8x8xf32>
    %61 = vector.extract_strided_slice %11 {offsets = [0, 16], sizes = [8, 8], strides = [1, 1]} : vector<8x32xf32> to vector<8x8xf32>
    %62 = arith.truncf %61 : vector<8x8xf32> to vector<8x8xbf16>
    %63 = vector.extract_strided_slice %17 {offsets = [0, 16], sizes = [8, 8], strides = [1, 1]} : vector<8x64xf32> to vector<8x8xf32>
    %64 = arith.truncf %63 : vector<8x8xf32> to vector<8x8xbf16>
    %65 = vector.extract_strided_slice %17 {offsets = [0, 48], sizes = [8, 8], strides = [1, 1]} : vector<8x64xf32> to vector<8x8xf32>
    %66 = arith.truncf %65 : vector<8x8xf32> to vector<8x8xbf16>
    %cst_26 = arith.constant dense<0.000000e+00> : vector<8x8xf32>
    %67 = tpu.matmul %62, %64, %cst_26 {dimension_numbers = #tpu.dot_dimension_numbers<[1], [1], [0], [0], [0, 0, 1, 0], [], []>} : vector<8x8xbf16>, vector<8x8xbf16>, vector<8x8xf32> -> vector<8x8xf32>
    %68 = arith.addf %67, %20 : vector<8x8xf32>
    %cst_27 = arith.constant dense<0xFF800000> : vector<8xf32>
    %69 = vector.multi_reduction <maximumf>, %68, %cst_27 [1] : vector<8x8xf32> to vector<8xf32>
    %70 = vector.shape_cast %69 : vector<8xf32> to vector<8x1xf32>
    %71 = vector.broadcast %70 : vector<8x1xf32> to vector<8x8xf32>
    %72 = arith.subf %68, %71 : vector<8x8xf32>
    %73 = math.exp %72 : vector<8x8xf32>
    %cst_28 = arith.constant dense<0.000000e+00> : vector<8xf32>
    %74 = vector.multi_reduction <add>, %73, %cst_28 [1] : vector<8x8xf32> to vector<8xf32>
    %75 = vector.shape_cast %74 : vector<8xf32> to vector<8x1xf32>
    %76 = tpu.reciprocal %75 {approx = true} : vector<8x1xf32> -> vector<8x1xf32>
    %77 = vector.broadcast %76 : vector<8x1xf32> to vector<8x8xf32>
    %78 = arith.mulf %73, %77 : vector<8x8xf32>
    %79 = arith.truncf %78 : vector<8x8xf32> to vector<8x8xbf16>
    %cst_29 = arith.constant dense<0.000000e+00> : vector<8x8xf32>
    %80 = tpu.matmul %79, %66, %cst_29 {dimension_numbers = #tpu.dot_dimension_numbers<[1], [0], [0], [1], [0, 0, 1, 1], [], []>} : vector<8x8xbf16>, vector<8x8xbf16>, vector<8x8xf32> -> vector<8x8xf32>
    %81 = vector.extract_strided_slice %11 {offsets = [0, 24], sizes = [8, 8], strides = [1, 1]} : vector<8x32xf32> to vector<8x8xf32>
    %82 = arith.truncf %81 : vector<8x8xf32> to vector<8x8xbf16>
    %83 = vector.extract_strided_slice %17 {offsets = [0, 24], sizes = [8, 8], strides = [1, 1]} : vector<8x64xf32> to vector<8x8xf32>
    %84 = arith.truncf %83 : vector<8x8xf32> to vector<8x8xbf16>
    %85 = vector.extract_strided_slice %17 {offsets = [0, 56], sizes = [8, 8], strides = [1, 1]} : vector<8x64xf32> to vector<8x8xf32>
    %86 = arith.truncf %85 : vector<8x8xf32> to vector<8x8xbf16>
    %cst_30 = arith.constant dense<0.000000e+00> : vector<8x8xf32>
    %87 = tpu.matmul %82, %84, %cst_30 {dimension_numbers = #tpu.dot_dimension_numbers<[1], [1], [0], [0], [0, 0, 1, 0], [], []>} : vector<8x8xbf16>, vector<8x8xbf16>, vector<8x8xf32> -> vector<8x8xf32>
    %88 = arith.addf %87, %20 : vector<8x8xf32>
    %cst_31 = arith.constant dense<0xFF800000> : vector<8xf32>
    %89 = vector.multi_reduction <maximumf>, %88, %cst_31 [1] : vector<8x8xf32> to vector<8xf32>
    %90 = vector.shape_cast %89 : vector<8xf32> to vector<8x1xf32>
    %91 = vector.broadcast %90 : vector<8x1xf32> to vector<8x8xf32>
    %92 = arith.subf %88, %91 : vector<8x8xf32>
    %93 = math.exp %92 : vector<8x8xf32>
    %cst_32 = arith.constant dense<0.000000e+00> : vector<8xf32>
    %94 = vector.multi_reduction <add>, %93, %cst_32 [1] : vector<8x8xf32> to vector<8xf32>
    %95 = vector.shape_cast %94 : vector<8xf32> to vector<8x1xf32>
    %96 = tpu.reciprocal %95 {approx = true} : vector<8x1xf32> -> vector<8x1xf32>
    %97 = vector.broadcast %96 : vector<8x1xf32> to vector<8x8xf32>
    %98 = arith.mulf %93, %97 : vector<8x8xf32>
    %99 = arith.truncf %98 : vector<8x8xf32> to vector<8x8xbf16>
    %cst_33 = arith.constant dense<0.000000e+00> : vector<8x8xf32>
    %100 = tpu.matmul %99, %86, %cst_33 {dimension_numbers = #tpu.dot_dimension_numbers<[1], [0], [0], [1], [0, 0, 1, 1], [], []>} : vector<8x8xbf16>, vector<8x8xbf16>, vector<8x8xf32> -> vector<8x8xf32>
    %101 = tpu.concatenate %40, %60, %80, %100 in 1 : vector<8x8xf32>, vector<8x8xf32>, vector<8x8xf32>, vector<8x8xf32> -> vector<8x32xf32>
    %102 = arith.truncf %101 : vector<8x32xf32> to vector<8x32xbf16>
    %c0_34 = arith.constant 0 : index
    %c0_35 = arith.constant 0 : index
    %103 = vector.load %arg7[%c0_34, %c0_35] : memref<32x32xbf16, #tpu.memory_space<vmem>>, vector<32x32xbf16>
    %cst_36 = arith.constant dense<0.000000e+00> : vector<8x32xf32>
    %104 = tpu.matmul %102, %103, %cst_36 {dimension_numbers = #tpu.dot_dimension_numbers<[1], [0], [0], [1], [0, 0, 1, 1], [], []>} : vector<8x32xbf16>, vector<32x32xbf16>, vector<8x32xf32> -> vector<8x32xf32>
    %c0_37 = arith.constant 0 : index
    %c0_38 = arith.constant 0 : index
    %105 = vector.load %arg8[%c0_37, %c0_38] : memref<1x32xf32, #tpu.memory_space<vmem>>, vector<1x32xf32>
    %106 = vector.broadcast %105 : vector<1x32xf32> to vector<8x32xf32>
    %107 = arith.addf %104, %106 : vector<8x32xf32>
    %108 = arith.addf %1, %107 : vector<8x32xf32>
    %cst_39 = arith.constant dense<0.000000e+00> : vector<8xf32>
    %109 = vector.multi_reduction <add>, %108, %cst_39 [1] : vector<8x32xf32> to vector<8xf32>
    %110 = vector.shape_cast %109 : vector<8xf32> to vector<8x1xf32>
    %cst_40 = arith.constant 3.200000e+01 : f32
    %111 = vector.broadcast %cst_40 : f32 to vector<8x1xf32>
    %112 = arith.divf %110, %111 : vector<8x1xf32>
    %113 = vector.broadcast %112 : vector<8x1xf32> to vector<8x32xf32>
    %114 = arith.subf %108, %113 : vector<8x32xf32>
    %115 = arith.mulf %114, %114 : vector<8x32xf32>
    %cst_41 = arith.constant dense<0.000000e+00> : vector<8xf32>
    %116 = vector.multi_reduction <add>, %115, %cst_41 [1] : vector<8x32xf32> to vector<8xf32>
    %117 = vector.shape_cast %116 : vector<8xf32> to vector<8x1xf32>
    %cst_42 = arith.constant 3.200000e+01 : f32
    %118 = vector.broadcast %cst_42 : f32 to vector<8x1xf32>
    %119 = arith.divf %117, %118 : vector<8x1xf32>
    %120 = vector.broadcast %112 : vector<8x1xf32> to vector<8x32xf32>
    %121 = arith.subf %108, %120 : vector<8x32xf32>
    %cst_43 = arith.constant 9.99999974E-6 : f32
    %122 = vector.broadcast %cst_43 : f32 to vector<8x1xf32>
    %123 = arith.addf %119, %122 : vector<8x1xf32>
    %124 = math.rsqrt %123 : vector<8x1xf32>
    %125 = vector.broadcast %124 : vector<8x1xf32> to vector<8x32xf32>
    %126 = arith.mulf %121, %125 : vector<8x32xf32>
    %c0_44 = arith.constant 0 : index
    %c0_45 = arith.constant 0 : index
    %127 = vector.load %arg10[%c0_44, %c0_45] : memref<1x32xf32, #tpu.memory_space<vmem>>, vector<1x32xf32>
    %128 = vector.broadcast %127 : vector<1x32xf32> to vector<8x32xf32>
    %129 = arith.mulf %126, %128 : vector<8x32xf32>
    %c0_46 = arith.constant 0 : index
    %c0_47 = arith.constant 0 : index
    %130 = vector.load %arg11[%c0_46, %c0_47] : memref<1x32xf32, #tpu.memory_space<vmem>>, vector<1x32xf32>
    %131 = vector.broadcast %130 : vector<1x32xf32> to vector<8x32xf32>
    %132 = arith.addf %129, %131 : vector<8x32xf32>
    %c0_48 = arith.constant 0 : index
    %c0_49 = arith.constant 0 : index
    %c0_50 = arith.constant 0 : index
    %133 = vector.load %arg12[%c0_48, %c0_49, %c0_50] : memref<1x8x32xf32, #tpu.memory_space<vmem>>, vector<1x8x32xf32>
    %134 = vector.shape_cast %133 : vector<1x8x32xf32> to vector<8x32xf32>
    %135 = vector.shape_cast %132 : vector<8x32xf32> to vector<1x8x32xf32>
    tpu.vector_store %arg12[%c0_48, %c0_49, %c0_50], %135 {strides = array<i32>} : memref<1x8x32xf32, #tpu.memory_space<vmem>>, vector<1x8x32xf32>,
    return
  }
  func.func @transform_0(%arg0: i32) -> (i32, i32, i32) {
    %c0_i32 = arith.constant 0 : i32
    %c0_i32_0 = arith.constant 0 : i32
    %c0_i32_1 = arith.constant 0 : i32
    return %arg0, %c0_i32, %c0_i32_0 : i32, i32, i32
  }
  func.func @transform_1(%arg0: i32) -> (i32, i32, i32) {
    %c0_i32 = arith.constant 0 : i32
    %c0_i32_0 = arith.constant 0 : i32
    %c0_i32_1 = arith.constant 0 : i32
    return %arg0, %c0_i32, %c0_i32_0 : i32, i32, i32
  }
  func.func @transform_2(%arg0: i32) -> (i32, i32) {
    %c0_i32 = arith.constant 0 : i32
    %c0_i32_0 = arith.constant 0 : i32
    %c0_i32_1 = arith.constant 0 : i32
    return %c0_i32, %c0_i32_0 : i32, i32
  }
  func.func @transform_3(%arg0: i32) -> (i32, i32) {
    %c0_i32 = arith.constant 0 : i32
    %c0_i32_0 = arith.constant 0 : i32
    %c0_i32_1 = arith.constant 0 : i32
    return %c0_i32, %c0_i32_0 : i32, i32
  }
  func.func @transform_4(%arg0: i32) -> (i32, i32) {
    %c0_i32 = arith.constant 0 : i32
    %c0_i32_0 = arith.constant 0 : i32
    %c0_i32_1 = arith.constant 0 : i32
    return %c0_i32, %c0_i32_0 : i32, i32
  }
  func.func @transform_5(%arg0: i32) -> (i32, i32) {
    %c0_i32 = arith.constant 0 : i32
    %c0_i32_0 = arith.constant 0 : i32
    %c0_i32_1 = arith.constant 0 : i32
    return %c0_i32, %c0_i32_0 : i32, i32
  }
  func.func @transform_6(%arg0: i32) -> (i32, i32) {
    %c0_i32 = arith.constant 0 : i32
    %c0_i32_0 = arith.constant 0 : i32
    %c0_i32_1 = arith.constant 0 : i32
    return %c0_i32, %c0_i32_0 : i32, i32
  }
  func.func @transform_7(%arg0: i32) -> (i32, i32) {
    %c0_i32 = arith.constant 0 : i32
    %c0_i32_0 = arith.constant 0 : i32
    %c0_i32_1 = arith.constant 0 : i32
    return %c0_i32, %c0_i32_0 : i32, i32
  }
  func.func @transform_8(%arg0: i32) -> (i32, i32) {
    %c0_i32 = arith.constant 0 : i32
    %c0_i32_0 = arith.constant 0 : i32
    %c0_i32_1 = arith.constant 0 : i32
    return %c0_i32, %c0_i32_0 : i32, i32
  }
  func.func @transform_9(%arg0: i32) -> (i32, i32) {
    %c0_i32 = arith.constant 0 : i32
    %c0_i32_0 = arith.constant 0 : i32
    %c0_i32_1 = arith.constant 0 : i32
    return %c0_i32, %c0_i32_0 : i32, i32
  }
  func.func @transform_10(%arg0: i32) -> (i32, i32) {
    %c0_i32 = arith.constant 0 : i32
    %c0_i32_0 = arith.constant 0 : i32
    %c0_i32_1 = arith.constant 0 : i32
    return %c0_i32, %c0_i32_0 : i32, i32
  }
  func.func @transform_11(%arg0: i32) -> (i32, i32, i32) {
    %c0_i32 = arith.constant 0 : i32
    %c0_i32_0 = arith.constant 0 : i32
    %c0_i32_1 = arith.constant 0 : i32
    return %arg0, %c0_i32, %c0_i32_0 : i32, i32, i32
  }
}

module attributes {stable_mosaic.version = 11 : i64} {
  func.func @_mha_add_ln_kernel(%arg0: i32, %arg1: memref<1x8x32xf32, #tpu.memory_space<vmem>>, %arg2: memref<1x8x32xf32, #tpu.memory_space<vmem>>, %arg3: memref<32x32xbf16, #tpu.memory_space<vmem>>, %arg4: memref<1x32xf32, #tpu.memory_space<vmem>>, %arg5: memref<32x64xbf16, #tpu.memory_space<vmem>>, %arg6: memref<1x64xf32, #tpu.memory_space<vmem>>, %arg7: memref<32x32xbf16, #tpu.memory_space<vmem>>, %arg8: memref<1x32xf32, #tpu.memory_space<vmem>>, %arg9: memref<1x32xf32, #tpu.memory_space<vmem>>, %arg10: memref<1x32xf32, #tpu.memory_space<vmem>>, %arg11: memref<1x8x32xf32, #tpu.memory_space<vmem>>) attributes {dimension_semantics = [#tpu.dimension_semantics<parallel>], iteration_bounds = array<i64: 2>, scalar_prefetch = 0 : i64, scratch_operands = 0 : i64, tpu.core_type = #tpu.core_type<tc>, window_params = [{transform_indices = @transform_0, window_bounds = array<i64: 1, 8, 32>}, {transform_indices = @transform_1, window_bounds = array<i64: 1, 8, 32>}, {pipeline_mode = #tpu.pipeline_mode<synchronous>, transform_indices = @transform_2, window_bounds = array<i64: 32, 32>}, {pipeline_mode = #tpu.pipeline_mode<synchronous>, transform_indices = @transform_3, window_bounds = array<i64: 1, 32>}, {pipeline_mode = #tpu.pipeline_mode<synchronous>, transform_indices = @transform_4, window_bounds = array<i64: 32, 64>}, {pipeline_mode = #tpu.pipeline_mode<synchronous>, transform_indices = @transform_5, window_bounds = array<i64: 1, 64>}, {pipeline_mode = #tpu.pipeline_mode<synchronous>, transform_indices = @transform_6, window_bounds = array<i64: 32, 32>}, {pipeline_mode = #tpu.pipeline_mode<synchronous>, transform_indices = @transform_7, window_bounds = array<i64: 1, 32>}, {pipeline_mode = #tpu.pipeline_mode<synchronous>, transform_indices = @transform_8, window_bounds = array<i64: 1, 32>}, {pipeline_mode = #tpu.pipeline_mode<synchronous>, transform_indices = @transform_9, window_bounds = array<i64: 1, 32>}, {transform_indices = @transform_10, window_bounds = array<i64: 1, 8, 32>}]} {
    %c0 = arith.constant 0 : index
    %c0_0 = arith.constant 0 : index
    %c0_1 = arith.constant 0 : index
    %0 = vector.load %arg1[%c0, %c0_0, %c0_1] : memref<1x8x32xf32, #tpu.memory_space<vmem>>, vector<1x8x32xf32>
    %1 = vector.shape_cast %0 : vector<1x8x32xf32> to vector<8x32xf32>
    %c0_2 = arith.constant 0 : index
    %c0_3 = arith.constant 0 : index
    %c0_4 = arith.constant 0 : index
    %2 = vector.load %arg2[%c0_2, %c0_3, %c0_4] : memref<1x8x32xf32, #tpu.memory_space<vmem>>, vector<1x8x32xf32>
    %3 = vector.shape_cast %2 : vector<1x8x32xf32> to vector<8x32xf32>
    %4 = arith.truncf %1 : vector<8x32xf32> to vector<8x32xbf16>
    %c0_5 = arith.constant 0 : index
    %c0_6 = arith.constant 0 : index
    %5 = vector.load %arg3[%c0_5, %c0_6] : memref<32x32xbf16, #tpu.memory_space<vmem>>, vector<32x32xbf16>
    %cst = arith.constant dense<0.000000e+00> : vector<8x32xf32>
    %6 = tpu.matmul %4, %5, %cst {dimension_numbers = #tpu.dot_dimension_numbers<[1], [0], [0], [1], [0, 0, 1, 1], [], []>} : vector<8x32xbf16>, vector<32x32xbf16>, vector<8x32xf32> -> vector<8x32xf32>
    %c0_7 = arith.constant 0 : index
    %c0_8 = arith.constant 0 : index
    %7 = vector.load %arg4[%c0_7, %c0_8] : memref<1x32xf32, #tpu.memory_space<vmem>>, vector<1x32xf32>
    %8 = vector.broadcast %7 : vector<1x32xf32> to vector<8x32xf32>
    %9 = arith.addf %6, %8 : vector<8x32xf32>
    %cst_9 = arith.constant 0.353553385 : f32
    %10 = vector.broadcast %cst_9 : f32 to vector<8x32xf32>
    %11 = arith.mulf %9, %10 : vector<8x32xf32>
    %12 = arith.truncf %3 : vector<8x32xf32> to vector<8x32xbf16>
    %c0_10 = arith.constant 0 : index
    %c0_11 = arith.constant 0 : index
    %13 = vector.load %arg5[%c0_10, %c0_11] : memref<32x64xbf16, #tpu.memory_space<vmem>>, vector<32x64xbf16>
    %cst_12 = arith.constant dense<0.000000e+00> : vector<8x64xf32>
    %14 = tpu.matmul %12, %13, %cst_12 {dimension_numbers = #tpu.dot_dimension_numbers<[1], [0], [0], [1], [0, 0, 1, 1], [], []>} : vector<8x32xbf16>, vector<32x64xbf16>, vector<8x64xf32> -> vector<8x64xf32>
    %c0_13 = arith.constant 0 : index
    %c0_14 = arith.constant 0 : index
    %15 = vector.load %arg6[%c0_13, %c0_14] : memref<1x64xf32, #tpu.memory_space<vmem>>, vector<1x64xf32>
    %16 = vector.broadcast %15 : vector<1x64xf32> to vector<8x64xf32>
    %17 = arith.addf %14, %16 : vector<8x64xf32>
    %18 = tpu.iota {dimensions = array<i32: 0>} : vector<8x8xi32>
    %19 = tpu.iota {dimensions = array<i32: 1>} : vector<8x8xi32>
    %20 = arith.cmpi sgt, %19, %18 : vector<8x8xi32>
    %cst_15 = arith.constant -1.000000e+09 : f32
    %cst_16 = arith.constant 0.000000e+00 : f32
    %21 = vector.broadcast %cst_15 : f32 to vector<8x8xf32>
    %22 = vector.broadcast %cst_16 : f32 to vector<8x8xf32>
    %23 = arith.select %20, %21, %22 : vector<8x8xi1>, vector<8x8xf32>
    %24 = vector.extract_strided_slice %11 {offsets = [0, 0], sizes = [8, 8], strides = [1, 1]} : vector<8x32xf32> to vector<8x8xf32>
    %25 = arith.truncf %24 : vector<8x8xf32> to vector<8x8xbf16>
    %26 = vector.extract_strided_slice %17 {offsets = [0, 0], sizes = [8, 8], strides = [1, 1]} : vector<8x64xf32> to vector<8x8xf32>
    %27 = arith.truncf %26 : vector<8x8xf32> to vector<8x8xbf16>
    %28 = vector.extract_strided_slice %17 {offsets = [0, 32], sizes = [8, 8], strides = [1, 1]} : vector<8x64xf32> to vector<8x8xf32>
    %29 = arith.truncf %28 : vector<8x8xf32> to vector<8x8xbf16>
    %cst_17 = arith.constant dense<0.000000e+00> : vector<8x8xf32>
    %30 = tpu.matmul %25, %27, %cst_17 {dimension_numbers = #tpu.dot_dimension_numbers<[1], [1], [0], [0], [0, 0, 1, 0], [], []>} : vector<8x8xbf16>, vector<8x8xbf16>, vector<8x8xf32> -> vector<8x8xf32>
    %31 = arith.addf %30, %23 : vector<8x8xf32>
    %cst_18 = arith.constant dense<0xFF800000> : vector<8xf32>
    %32 = vector.multi_reduction <maximumf>, %31, %cst_18 [1] : vector<8x8xf32> to vector<8xf32>
    %33 = vector.shape_cast %32 : vector<8xf32> to vector<8x1xf32>
    %34 = vector.broadcast %33 : vector<8x1xf32> to vector<8x8xf32>
    %35 = arith.subf %31, %34 : vector<8x8xf32>
    %36 = math.exp %35 : vector<8x8xf32>
    %cst_19 = arith.constant dense<0.000000e+00> : vector<8xf32>
    %37 = vector.multi_reduction <add>, %36, %cst_19 [1] : vector<8x8xf32> to vector<8xf32>
    %38 = vector.shape_cast %37 : vector<8xf32> to vector<8x1xf32>
    %39 = tpu.reciprocal %38 {approx = true} : vector<8x1xf32> -> vector<8x1xf32>
    %40 = vector.broadcast %39 : vector<8x1xf32> to vector<8x8xf32>
    %41 = arith.mulf %36, %40 : vector<8x8xf32>
    %42 = arith.truncf %41 : vector<8x8xf32> to vector<8x8xbf16>
    %cst_20 = arith.constant dense<0.000000e+00> : vector<8x8xf32>
    %43 = tpu.matmul %42, %29, %cst_20 {dimension_numbers = #tpu.dot_dimension_numbers<[1], [0], [0], [1], [0, 0, 1, 1], [], []>} : vector<8x8xbf16>, vector<8x8xbf16>, vector<8x8xf32> -> vector<8x8xf32>
    %44 = vector.extract_strided_slice %11 {offsets = [0, 8], sizes = [8, 8], strides = [1, 1]} : vector<8x32xf32> to vector<8x8xf32>
    %45 = arith.truncf %44 : vector<8x8xf32> to vector<8x8xbf16>
    %46 = vector.extract_strided_slice %17 {offsets = [0, 8], sizes = [8, 8], strides = [1, 1]} : vector<8x64xf32> to vector<8x8xf32>
    %47 = arith.truncf %46 : vector<8x8xf32> to vector<8x8xbf16>
    %48 = vector.extract_strided_slice %17 {offsets = [0, 40], sizes = [8, 8], strides = [1, 1]} : vector<8x64xf32> to vector<8x8xf32>
    %49 = arith.truncf %48 : vector<8x8xf32> to vector<8x8xbf16>
    %cst_21 = arith.constant dense<0.000000e+00> : vector<8x8xf32>
    %50 = tpu.matmul %45, %47, %cst_21 {dimension_numbers = #tpu.dot_dimension_numbers<[1], [1], [0], [0], [0, 0, 1, 0], [], []>} : vector<8x8xbf16>, vector<8x8xbf16>, vector<8x8xf32> -> vector<8x8xf32>
    %51 = arith.addf %50, %23 : vector<8x8xf32>
    %cst_22 = arith.constant dense<0xFF800000> : vector<8xf32>
    %52 = vector.multi_reduction <maximumf>, %51, %cst_22 [1] : vector<8x8xf32> to vector<8xf32>
    %53 = vector.shape_cast %52 : vector<8xf32> to vector<8x1xf32>
    %54 = vector.broadcast %53 : vector<8x1xf32> to vector<8x8xf32>
    %55 = arith.subf %51, %54 : vector<8x8xf32>
    %56 = math.exp %55 : vector<8x8xf32>
    %cst_23 = arith.constant dense<0.000000e+00> : vector<8xf32>
    %57 = vector.multi_reduction <add>, %56, %cst_23 [1] : vector<8x8xf32> to vector<8xf32>
    %58 = vector.shape_cast %57 : vector<8xf32> to vector<8x1xf32>
    %59 = tpu.reciprocal %58 {approx = true} : vector<8x1xf32> -> vector<8x1xf32>
    %60 = vector.broadcast %59 : vector<8x1xf32> to vector<8x8xf32>
    %61 = arith.mulf %56, %60 : vector<8x8xf32>
    %62 = arith.truncf %61 : vector<8x8xf32> to vector<8x8xbf16>
    %cst_24 = arith.constant dense<0.000000e+00> : vector<8x8xf32>
    %63 = tpu.matmul %62, %49, %cst_24 {dimension_numbers = #tpu.dot_dimension_numbers<[1], [0], [0], [1], [0, 0, 1, 1], [], []>} : vector<8x8xbf16>, vector<8x8xbf16>, vector<8x8xf32> -> vector<8x8xf32>
    %64 = vector.extract_strided_slice %11 {offsets = [0, 16], sizes = [8, 8], strides = [1, 1]} : vector<8x32xf32> to vector<8x8xf32>
    %65 = arith.truncf %64 : vector<8x8xf32> to vector<8x8xbf16>
    %66 = vector.extract_strided_slice %17 {offsets = [0, 16], sizes = [8, 8], strides = [1, 1]} : vector<8x64xf32> to vector<8x8xf32>
    %67 = arith.truncf %66 : vector<8x8xf32> to vector<8x8xbf16>
    %68 = vector.extract_strided_slice %17 {offsets = [0, 48], sizes = [8, 8], strides = [1, 1]} : vector<8x64xf32> to vector<8x8xf32>
    %69 = arith.truncf %68 : vector<8x8xf32> to vector<8x8xbf16>
    %cst_25 = arith.constant dense<0.000000e+00> : vector<8x8xf32>
    %70 = tpu.matmul %65, %67, %cst_25 {dimension_numbers = #tpu.dot_dimension_numbers<[1], [1], [0], [0], [0, 0, 1, 0], [], []>} : vector<8x8xbf16>, vector<8x8xbf16>, vector<8x8xf32> -> vector<8x8xf32>
    %71 = arith.addf %70, %23 : vector<8x8xf32>
    %cst_26 = arith.constant dense<0xFF800000> : vector<8xf32>
    %72 = vector.multi_reduction <maximumf>, %71, %cst_26 [1] : vector<8x8xf32> to vector<8xf32>
    %73 = vector.shape_cast %72 : vector<8xf32> to vector<8x1xf32>
    %74 = vector.broadcast %73 : vector<8x1xf32> to vector<8x8xf32>
    %75 = arith.subf %71, %74 : vector<8x8xf32>
    %76 = math.exp %75 : vector<8x8xf32>
    %cst_27 = arith.constant dense<0.000000e+00> : vector<8xf32>
    %77 = vector.multi_reduction <add>, %76, %cst_27 [1] : vector<8x8xf32> to vector<8xf32>
    %78 = vector.shape_cast %77 : vector<8xf32> to vector<8x1xf32>
    %79 = tpu.reciprocal %78 {approx = true} : vector<8x1xf32> -> vector<8x1xf32>
    %80 = vector.broadcast %79 : vector<8x1xf32> to vector<8x8xf32>
    %81 = arith.mulf %76, %80 : vector<8x8xf32>
    %82 = arith.truncf %81 : vector<8x8xf32> to vector<8x8xbf16>
    %cst_28 = arith.constant dense<0.000000e+00> : vector<8x8xf32>
    %83 = tpu.matmul %82, %69, %cst_28 {dimension_numbers = #tpu.dot_dimension_numbers<[1], [0], [0], [1], [0, 0, 1, 1], [], []>} : vector<8x8xbf16>, vector<8x8xbf16>, vector<8x8xf32> -> vector<8x8xf32>
    %84 = vector.extract_strided_slice %11 {offsets = [0, 24], sizes = [8, 8], strides = [1, 1]} : vector<8x32xf32> to vector<8x8xf32>
    %85 = arith.truncf %84 : vector<8x8xf32> to vector<8x8xbf16>
    %86 = vector.extract_strided_slice %17 {offsets = [0, 24], sizes = [8, 8], strides = [1, 1]} : vector<8x64xf32> to vector<8x8xf32>
    %87 = arith.truncf %86 : vector<8x8xf32> to vector<8x8xbf16>
    %88 = vector.extract_strided_slice %17 {offsets = [0, 56], sizes = [8, 8], strides = [1, 1]} : vector<8x64xf32> to vector<8x8xf32>
    %89 = arith.truncf %88 : vector<8x8xf32> to vector<8x8xbf16>
    %cst_29 = arith.constant dense<0.000000e+00> : vector<8x8xf32>
    %90 = tpu.matmul %85, %87, %cst_29 {dimension_numbers = #tpu.dot_dimension_numbers<[1], [1], [0], [0], [0, 0, 1, 0], [], []>} : vector<8x8xbf16>, vector<8x8xbf16>, vector<8x8xf32> -> vector<8x8xf32>
    %91 = arith.addf %90, %23 : vector<8x8xf32>
    %cst_30 = arith.constant dense<0xFF800000> : vector<8xf32>
    %92 = vector.multi_reduction <maximumf>, %91, %cst_30 [1] : vector<8x8xf32> to vector<8xf32>
    %93 = vector.shape_cast %92 : vector<8xf32> to vector<8x1xf32>
    %94 = vector.broadcast %93 : vector<8x1xf32> to vector<8x8xf32>
    %95 = arith.subf %91, %94 : vector<8x8xf32>
    %96 = math.exp %95 : vector<8x8xf32>
    %cst_31 = arith.constant dense<0.000000e+00> : vector<8xf32>
    %97 = vector.multi_reduction <add>, %96, %cst_31 [1] : vector<8x8xf32> to vector<8xf32>
    %98 = vector.shape_cast %97 : vector<8xf32> to vector<8x1xf32>
    %99 = tpu.reciprocal %98 {approx = true} : vector<8x1xf32> -> vector<8x1xf32>
    %100 = vector.broadcast %99 : vector<8x1xf32> to vector<8x8xf32>
    %101 = arith.mulf %96, %100 : vector<8x8xf32>
    %102 = arith.truncf %101 : vector<8x8xf32> to vector<8x8xbf16>
    %cst_32 = arith.constant dense<0.000000e+00> : vector<8x8xf32>
    %103 = tpu.matmul %102, %89, %cst_32 {dimension_numbers = #tpu.dot_dimension_numbers<[1], [0], [0], [1], [0, 0, 1, 1], [], []>} : vector<8x8xbf16>, vector<8x8xbf16>, vector<8x8xf32> -> vector<8x8xf32>
    %104 = tpu.concatenate %43, %63, %83, %103 in 1 : vector<8x8xf32>, vector<8x8xf32>, vector<8x8xf32>, vector<8x8xf32> -> vector<8x32xf32>
    %105 = arith.truncf %104 : vector<8x32xf32> to vector<8x32xbf16>
    %c0_33 = arith.constant 0 : index
    %c0_34 = arith.constant 0 : index
    %106 = vector.load %arg7[%c0_33, %c0_34] : memref<32x32xbf16, #tpu.memory_space<vmem>>, vector<32x32xbf16>
    %cst_35 = arith.constant dense<0.000000e+00> : vector<8x32xf32>
    %107 = tpu.matmul %105, %106, %cst_35 {dimension_numbers = #tpu.dot_dimension_numbers<[1], [0], [0], [1], [0, 0, 1, 1], [], []>} : vector<8x32xbf16>, vector<32x32xbf16>, vector<8x32xf32> -> vector<8x32xf32>
    %c0_36 = arith.constant 0 : index
    %c0_37 = arith.constant 0 : index
    %108 = vector.load %arg8[%c0_36, %c0_37] : memref<1x32xf32, #tpu.memory_space<vmem>>, vector<1x32xf32>
    %109 = vector.broadcast %108 : vector<1x32xf32> to vector<8x32xf32>
    %110 = arith.addf %107, %109 : vector<8x32xf32>
    %111 = arith.addf %1, %110 : vector<8x32xf32>
    %cst_38 = arith.constant dense<0.000000e+00> : vector<8xf32>
    %112 = vector.multi_reduction <add>, %111, %cst_38 [1] : vector<8x32xf32> to vector<8xf32>
    %113 = vector.shape_cast %112 : vector<8xf32> to vector<8x1xf32>
    %cst_39 = arith.constant 3.200000e+01 : f32
    %114 = vector.broadcast %cst_39 : f32 to vector<8x1xf32>
    %115 = arith.divf %113, %114 : vector<8x1xf32>
    %116 = vector.broadcast %115 : vector<8x1xf32> to vector<8x32xf32>
    %117 = arith.subf %111, %116 : vector<8x32xf32>
    %118 = arith.mulf %117, %117 : vector<8x32xf32>
    %cst_40 = arith.constant dense<0.000000e+00> : vector<8xf32>
    %119 = vector.multi_reduction <add>, %118, %cst_40 [1] : vector<8x32xf32> to vector<8xf32>
    %120 = vector.shape_cast %119 : vector<8xf32> to vector<8x1xf32>
    %cst_41 = arith.constant 3.200000e+01 : f32
    %121 = vector.broadcast %cst_41 : f32 to vector<8x1xf32>
    %122 = arith.divf %120, %121 : vector<8x1xf32>
    %123 = vector.broadcast %115 : vector<8x1xf32> to vector<8x32xf32>
    %124 = arith.subf %111, %123 : vector<8x32xf32>
    %cst_42 = arith.constant 9.99999974E-6 : f32
    %125 = vector.broadcast %cst_42 : f32 to vector<8x1xf32>
    %126 = arith.addf %122, %125 : vector<8x1xf32>
    %127 = math.rsqrt %126 : vector<8x1xf32>
    %128 = vector.broadcast %127 : vector<8x1xf32> to vector<8x32xf32>
    %129 = arith.mulf %124, %128 : vector<8x32xf32>
    %c0_43 = arith.constant 0 : index
    %c0_44 = arith.constant 0 : index
    %130 = vector.load %arg9[%c0_43, %c0_44] : memref<1x32xf32, #tpu.memory_space<vmem>>, vector<1x32xf32>
    %131 = vector.broadcast %130 : vector<1x32xf32> to vector<8x32xf32>
    %132 = arith.mulf %129, %131 : vector<8x32xf32>
    %c0_45 = arith.constant 0 : index
    %c0_46 = arith.constant 0 : index
    %133 = vector.load %arg10[%c0_45, %c0_46] : memref<1x32xf32, #tpu.memory_space<vmem>>, vector<1x32xf32>
    %134 = vector.broadcast %133 : vector<1x32xf32> to vector<8x32xf32>
    %135 = arith.addf %132, %134 : vector<8x32xf32>
    %c0_47 = arith.constant 0 : index
    %c0_48 = arith.constant 0 : index
    %c0_49 = arith.constant 0 : index
    %136 = vector.load %arg11[%c0_47, %c0_48, %c0_49] : memref<1x8x32xf32, #tpu.memory_space<vmem>>, vector<1x8x32xf32>
    %137 = vector.shape_cast %136 : vector<1x8x32xf32> to vector<8x32xf32>
    %138 = vector.shape_cast %135 : vector<8x32xf32> to vector<1x8x32xf32>
    tpu.vector_store %arg11[%c0_47, %c0_48, %c0_49], %138 {strides = array<i32>} : memref<1x8x32xf32, #tpu.memory_space<vmem>>, vector<1x8x32xf32>,
    return
  }
  func.func @transform_0(%arg0: i32) -> (i32, i32, i32) {
    %c0_i32 = arith.constant 0 : i32
    %c0_i32_0 = arith.constant 0 : i32
    %c0_i32_1 = arith.constant 0 : i32
    return %arg0, %c0_i32, %c0_i32_0 : i32, i32, i32
  }
  func.func @transform_1(%arg0: i32) -> (i32, i32, i32) {
    %c0_i32 = arith.constant 0 : i32
    %c0_i32_0 = arith.constant 0 : i32
    %c0_i32_1 = arith.constant 0 : i32
    return %arg0, %c0_i32, %c0_i32_0 : i32, i32, i32
  }
  func.func @transform_2(%arg0: i32) -> (i32, i32) {
    %c0_i32 = arith.constant 0 : i32
    %c0_i32_0 = arith.constant 0 : i32
    %c0_i32_1 = arith.constant 0 : i32
    return %c0_i32, %c0_i32_0 : i32, i32
  }
  func.func @transform_3(%arg0: i32) -> (i32, i32) {
    %c0_i32 = arith.constant 0 : i32
    %c0_i32_0 = arith.constant 0 : i32
    %c0_i32_1 = arith.constant 0 : i32
    return %c0_i32, %c0_i32_0 : i32, i32
  }
  func.func @transform_4(%arg0: i32) -> (i32, i32) {
    %c0_i32 = arith.constant 0 : i32
    %c0_i32_0 = arith.constant 0 : i32
    %c0_i32_1 = arith.constant 0 : i32
    return %c0_i32, %c0_i32_0 : i32, i32
  }
  func.func @transform_5(%arg0: i32) -> (i32, i32) {
    %c0_i32 = arith.constant 0 : i32
    %c0_i32_0 = arith.constant 0 : i32
    %c0_i32_1 = arith.constant 0 : i32
    return %c0_i32, %c0_i32_0 : i32, i32
  }
  func.func @transform_6(%arg0: i32) -> (i32, i32) {
    %c0_i32 = arith.constant 0 : i32
    %c0_i32_0 = arith.constant 0 : i32
    %c0_i32_1 = arith.constant 0 : i32
    return %c0_i32, %c0_i32_0 : i32, i32
  }
  func.func @transform_7(%arg0: i32) -> (i32, i32) {
    %c0_i32 = arith.constant 0 : i32
    %c0_i32_0 = arith.constant 0 : i32
    %c0_i32_1 = arith.constant 0 : i32
    return %c0_i32, %c0_i32_0 : i32, i32
  }
  func.func @transform_8(%arg0: i32) -> (i32, i32) {
    %c0_i32 = arith.constant 0 : i32
    %c0_i32_0 = arith.constant 0 : i32
    %c0_i32_1 = arith.constant 0 : i32
    return %c0_i32, %c0_i32_0 : i32, i32
  }
  func.func @transform_9(%arg0: i32) -> (i32, i32) {
    %c0_i32 = arith.constant 0 : i32
    %c0_i32_0 = arith.constant 0 : i32
    %c0_i32_1 = arith.constant 0 : i32
    return %c0_i32, %c0_i32_0 : i32, i32
  }
  func.func @transform_10(%arg0: i32) -> (i32, i32, i32) {
    %c0_i32 = arith.constant 0 : i32
    %c0_i32_0 = arith.constant 0 : i32
    %c0_i32_1 = arith.constant 0 : i32
    return %arg0, %c0_i32, %c0_i32_0 : i32, i32, i32
  }
}

</mosaic_0001>

<bundles_post_ra>
// kernel: decoder_layer_forward.5
= control target key start
LH: loop header
LB: loop body
LE: loop exit
PB: predicated region body
PF: predicated region fallthrough
CT: control target
= control target key end

     0   :  { %12 = vsyncpa [#allocation4], 0  ;;  %s1038_s0 = inlined_call_operand.vmem [shape: f32[2,8,32], index: 0, kind: input, shape index: {}]   ;;  %s1039_s1 = inlined_call_operand.vmem [shape: bf16[32,64], index: 1, kind: input, shape index: {}]   ;;  %s1040_s2 = inlined_call_operand.vmem [shape: f32[1,64], index: 2, kind: input, shape index: {}]   ;;  %s1041_s3 = inlined_call_operand.vmem [shape: bf16[64,32], index: 3, kind: input, shape index: {}]   ;;  %s1042_s4 = inlined_call_operand.vmem [shape: f32[1,32], index: 4, kind: input, shape index: {}]   ;;  %s1043_s5 = inlined_call_operand.vmem [shape: f32[1,32], index: 5, kind: input, shape index: {}]   ;;  %s1044_s6 = inlined_call_operand.vmem [shape: f32[1,32], index: 6, kind: input, shape index: {}]   ;;  %s1045_s7 = inlined_call_operand.hbm [shape: f32[2,8,32], index: 7, kind: output, shape index: {}]  }
   0x1   :  { %14 = vsyncpa [#allocation4 + $0x1], 0  ;;  %s903_s24 = smov 0   ;;  %s905_s25 = smov 0  }
   0x2   :  { %s907_s26 = smov 0   ;;  %s909_s27 = smov 0  }
   0x3   :  { %s911_s28 = smov 0   ;;  %s913_s29 = smov 0  }
   0x4 LB: > { %s663_s30 = sadd.s32 4294967295, %s858_s29   ;;  %s664_s8 = sadd.s32 4294967294, %s858_s29   ;;  %s858_s29 = sphi %s913_s29, %s20_s29   ;;  %s854_s28 = sphi %s911_s28, %s1052_s28   ;;  %s850_s27 = sphi %s909_s27, %s1051_s27   ;;  %s846_s26 = sphi %s907_s26, %s1050_s26   ;;  %s842_s25 = sphi %s905_s25, %s1049_s25   ;;  %s838_s24 = sphi %s903_s24, %s1048_s24  }
   0x5   : > { %s32_s9 = sadd.s32 1, %s854_s28  ;;  %s206_s10 = sadd.s32 1, %s846_s26 }
   0x6   : > { %p34_p0 = scmp.ge.s32.totalorder %s32_s9, 2  ;;  %p216_p1 = scmp.ne.s32.totalorder %s846_s26, %s842_s25 }
   0x7   : > { %p217_p2 = scmp.eq.s32.totalorder %s663_s30, 1  ;;  %p222_p3 = scmp.ne.s32.totalorder %s842_s25, %s838_s24 }
   0x8   : > { %s1054_s9 = smov (%p34_p0, %s32_s9), 0  ;;  %p223_p5 = scmp.eq.s32.totalorder %s664_s8, 1 }
   0x9   : > { %p943_p4 = por %p217_p2, %p216_p1  ;;  %s203_s12 = ssub.s32 %s854_s28, %s1054_s9 }
   0xa   : > { %p670_p6 = scmp.ge.s32.totalorder %s858_s29, 1  ;;  %p204_p7 = scmp.eq.s32.totalorder %s203_s12, 0 }
   0xb   : > { %p950_p8 = por %p223_p5, %p222_p3  ;;  %p279_p9 = scmp.lt.s32.totalorder %s858_s29, 3 }
   0xc   : > { %s956_s14 = scalar_select %p204_p7, %s846_s26, %s206_s10  }
   0xd   : > { %p280_p10 = pnand %p670_p6, %p279_p9 }
   0xe   : > { %p322_p11 = scmp.lt.s32.totalorder (!%p280_p10), %s850_s27, 1  ;;  %s319_s23 = sand.u32 (!%p280_p10), 1, %s842_s25  }
   0xf   : > { %283 = sbr.rel (%p280_p10) target bundleno = 756 (0x2f4), region = 48  ;;  %s686_s16 = sshll.u32 (!%p280_p10), %s850_s27, 7 }
  0x10   : > { %s541_s22 = scalar_lea.sflag (!%p280_p10), [#allocation4], %s319_s23  ;;  %s862_s10 = smov (!%p280_p10), [#allocation3]  }
  0x14   : > { %v774_v0 = vld [vmem:[%s1039_s1 + $0x8] sm:$0xff]   ;;  %v860_v1 = vmov 0.0   ;;  %v775_v2 = vld [vmem:[%s1039_s1] sm:$0xff]   ;;  %vm861_vm0 = vmmov 0   ;;  %vm344_vm1 = vcmask 261120   ;;  %v776_v3 = vld [vmem:[%s1041_s3 + $0x18] sm:$0xff]  }
  0x15   : > { %697 = vmatprep.subr.bf16.mxu0 %v860_v1  ;;  %705 = vmatprep.subr.bf16.mxu1 %v860_v1  ;;  %345 = vst.msk [vmem:[#allocation2] sm:$0xff] %vm344_vm1, %v860_v1  ;;  %s323_s21 = scalar_select %p322_p11, %s850_s27, 1  ;;  %v777_v4 = vld [vmem:[%s1041_s3 + $0x10] sm:$0xff]   ;;  %v778_v7 = vld [vmem:[%s1041_s3 + $0x8] sm:$0xff]   ;;  %v779_v8 = vld [vmem:[%s1041_s3] sm:$0xff]   ;;  %vm450_vm2 = vcmask 523264  }
  0x16   : > { %698 = vmatpush3.bf16.msra.mxu0 %v774_v0  ;;  %701 = vmatprep.mubr.msk.bf16.mxu0 %vm861_vm0, %v860_v1  ;;  %v673_v9 = vld [vmem:[%s1040_s2] ss:$0 sm:$0xff] }
  0x17   : > { %699 = vmatprep.subr.bf16.mxu0 %v860_v1  ;;  %713 = vmatprep.mubr.msk.bf16.mxu1 %vm861_vm0, %v860_v1  ;;  %s672_s30 = sshll.u32 %s323_s21, 3  ;;  %v682_v24 = vld [vmem:[%s1042_s4] ss:$0 sm:$0xff]  ;;  %s552_s21 = scalar_lea.hbm %s1045_s7, %s686_s16 }
  0x18   : > { %706 = vmatpush3.bf16.msra.mxu1 %v776_v3  ;;  %s325_s12 = scalar_lea.vmem %s1038_s0, %s672_s30  ;;  %s671_s30 = sshll.u32 %s319_s23, 3  ;;  %v683_v37 = vld [vmem:[%s1043_s5] ss:$0 sm:$0xff] }
  0x19   : > { %707 = vmatprep.subr.bf16.mxu1 %v860_v1  ;;  %v346_v5 = vld [vmem:[%s325_s12] sm:$0xff]  ;;  %s321_s17 = scalar_lea.vmem [#allocation3], %s671_s30  ;;  %s786_s12 = sshll.u32 %s862_s10, 4  ;;  %s787_s12 = int_to_ptr.vmem [resolvable:$false] %s786_s12 }
  0x1a   : > { %700 = vmatpush3.bf16.msra.mxu0 %v775_v2  ;;  %v347_v6 = vpack.c.bf16 %v346_v5, %v346_v5  ;;  %v684_v39 = vld [vmem:[%s1044_s6] ss:$0 sm:$0xff]  ;;  %s554_s18 = sshll.u32 %s321_s17, 4  ;;  %s788_s27 = scalar_lea.vmem %s787_s12, 256  ;;  %s555_s18 = int_to_ptr.vmem [resolvable:$true] %s554_s18 }
  0x1b   : > { %s782_s8 = scalar_lea.vmem %s555_s18, 128  ;;  %p789_p1 = scmp.lt.s32.totalorder %s555_s18, %s787_s12 }
  0x1c   : > { %708 = vmatpush3.bf16.msra.mxu1 %v777_v4  ;;  %v416_v17 = vld [vmem:[#allocation2] sm:$0xff]  ;;  %p783_p12 = scmp.ne.s32.totalorder %s555_s18, %s782_s8  ;;  %p790_p2 = scmp.lt.s32.totalorder %s788_s27, %s782_s8 }
  0x1d   : > { %709 = vmatprep.subr.bf16.mxu1 %v860_v1  ;;  %702 = vmatmul.mubr.msk.bf16.vlgmr.msra.gmra.mxu0 %vm344_vm1, %v347_v6 }
  0x1e   : > { %p784_p13 = pnand %p783_p12, %p943_p4  ;;  %p791_p3 = por %p790_p2, %p789_p1 }
  0x20   : > { %710 = vmatpush3.bf16.msra.mxu1 %v778_v7  ;;  %p785_p0 = pneg %p784_p13 }
  0x21   : > { %711 = vmatprep.subr.bf16.mxu1 %v860_v1 }
  0x22   : > { %p792_p5 = pnand %p791_p3, %p785_p0 }
  0x24   : > { %712 = vmatpush3.bf16.msra.mxu1 %v779_v8 }
  0xdd   : > { %v409_v10 = vpop.f32.mrf.mxu0 }
  0xde   : > { %v410_v11 = vadd.f32 %v673_v9, %v409_v10 }
  0xdf   : > { %v703_v12 = vpop.f32.mrf.mxu0 }
  0xe0   : > { %v415_v13 = vmax.f32 %v410_v11, 0.0 }
  0xe1   : > { %v412_v14 = vpop.f32.mrf.mxu0 }
  0xe2   : > { %v417_v15 = vpack.c.bf16 %v415_v13, %v415_v13 }
  0xe3   : > { %v704_v16 = vpop.f32.mrf.mxu0 }
  0xe4   : > { %714 = vmatmul.mubr.msk.bf16.vlgmr.msra.gmra.mxu1 %vm450_vm2, %v417_v15 }
 0x1a4   : > { %v488_v18 = vpop.f32.mrf.mxu1 }
 0x1a5   : > { %v494_v19 = vadd.f32 %v488_v18, %v416_v17 }
 0x1a6   : > { %v715_v20 = vpop.f32.mrf.mxu1 }
 0x1a7   : > { %495 = vst.msk [vmem:[#allocation2] sm:$0xff] %vm344_vm1, %v494_v19 }
 0x1a8   : > { %v491_v21 = vpop.f32.mrf.mxu1 }
 0x1aa   : > { %v716_v22 = vpop.f32.mrf.mxu1 }
 0x1ae   : > { %v499_v23 = vld [vmem:[#allocation2] sm:$0xff] }
 0x1af   : > { %v500_v25 = vadd.f32 %v499_v23, %v346_v5 }
 0x1b1   : > { %v508_v26 = vadd.f32 %v682_v24, %v500_v25 }
 0x1b3   : > { %v509_v27 = vsel %vm344_vm1, %v508_v26, 0.0 }
 0x1b4   : > { %510 = vadd.xlane.f32.xlu0 %v509_v27 }
 0x23d   : > { %v511_v28 = vpop.xlane.xlu0 %510 }
 0x23e   : > { %v513_v29 = vmul.f32 0.03125, %v511_v28 }
 0x240   : > { %v514_v30 = vsub.f32 %v508_v26, %v513_v29 }
 0x242   : > { %v515_v31 = vmul.f32 %v514_v30, %v514_v30 }
 0x244   : > { %v516_v32 = vsel %vm344_vm1, %v515_v31, 0.0 }
 0x245   : > { %517 = vadd.xlane.f32.xlu0 %v516_v32 }
 0x2ce   : > { %v518_v33 = vpop.xlane.xlu0 %517 }
 0x2cf   : > { %v519_v34 = vmul.f32 0.03125, %v518_v33 }
 0x2d1   : > { %v520_v35 = vadd.f32 1e-05, %v519_v34 }
 0x2d3   : > { %780 = vrsqrt.f32 %v520_v35 }
 0x2e0   : > { %v781_v36 = vpop.eup %780 }
 0x2e1   : > { %v522_v38 = vmul.f32 %v781_v36, %v514_v30 }
 0x2e3   : > { %v530_v40 = vmul.f32 %v683_v37, %v522_v38 }
 0x2e5   : > { %v538_v41 = vadd.f32 %v684_v39, %v530_v40 }
 0x2e7   : > { %539 = vst.msk [vmem:[%s321_s17] sm:$0xff] %vm344_vm1, %v538_v41 }
 0x2e8   : > { %795 = shalt.err (!%p792_p5)
}
 0x2e9   : > { %s796_s30 = scalar_lea.hbm %s552_s21, 128  ;;  %s800_s16 = scalar_lea.hbm %s1045_s7, 256 }
 0x2ea   : > { %p797_p6 = scmp.ne.s32.totalorder %s552_s21, %s796_s30  ;;  %p801_p10 = scmp.lt.s32.totalorder %s552_s21, %s1045_s7 }
 0x2eb   : > { %p802_p11 = scmp.lt.s32.totalorder %s800_s16, %s796_s30 }
 0x2ec   : > { %p798_p7 = pnand %p797_p6, %p943_p4 }
 0x2ed   : > { %p803_p12 = por %p802_p11, %p801_p10 }
 0x2ee   : > { %p799_p9 = pneg %p798_p7 }
 0x2f0   : > { %p804_p13 = pnand %p803_p12, %p799_p9 }
 0x2f2   : > { %807 = shalt.err (!%p804_p13)
}
 0x2f3   : > { %717 = dma.vmem_to_hbm [thread:$0]  (%p943_p4), %s555_s18, 128, %s552_s21, %s541_s22  }
 0x2f4 PF: > { %p723_p0 = scmp.ge.s32.totalorder %s858_s29, 2  ;;  %s566_s20 = sand.u32 1, %s838_s24  }
 0x2f5   : > { %s567_s8 = scalar_lea.sflag [#allocation4], %s566_s20 }
 0x2f6   : > { %p720_p1 = pnand %p723_p0, %p950_p8 }
 0x2f8   : > { %p721_p2 = pneg %p720_p1 }
 0x2fa   : > { %833 = dma.done.wait (%p721_p2), %s567_s8, 128  }
 0x2fb   : > { %835 = vsyncadd (%p721_p2), %s567_s8, 4294967168  ;;  %s20_s29 = sadd.s32 1, %s858_s29   ;;  %s1048_s24 = smov %s842_s25 }
 0x2fc   : > { %p17_p3 = scmp.ge.s32.totalorder %s20_s29, 4   ;;  %s1049_s25 = smov %s846_s26 }
 0x2fd   : > { %s1050_s26 = smov %s956_s14  ;;  %s1051_s27 = smov %s854_s28 }
 0x2fe   : > { %s1052_s28 = smov %s1054_s9  ;;  %19 = sbr.rel (!%p17_p3) target bundleno = 4 (0x4), region = 100 }
 0x303   :  { %572 = vsyncpa [#allocation4], 1 }
 0x304   :  { %574 = vsyncpa [#allocation4 + $0x1], 1 }

// kernel: decoder_layer_forward.4
= control target key start
LH: loop header
LB: loop body
LE: loop exit
PB: predicated region body
PF: predicated region fallthrough
CT: control target
= control target key end

     0   :  { %s1416_s17 = smov 0   ;;  %s1559_s0 = inlined_call_operand.vmem [shape: f32[2,8,32], index: 0, kind: input, shape index: {}]   ;;  %s1560_s1 = inlined_call_operand.vmem [shape: f32[2,8,32], index: 1, kind: input, shape index: {}]   ;;  %s1561_s2 = inlined_call_operand.vmem [shape: bf16[32,32], index: 2, kind: input, shape index: {}]   ;;  %s1562_s3 = inlined_call_operand.vmem [shape: f32[1,32], index: 3, kind: input, shape index: {}]   ;;  %s1563_s4 = inlined_call_operand.vmem [shape: bf16[32,64], index: 4, kind: input, shape index: {}]   ;;  %s1564_s5 = inlined_call_operand.vmem [shape: f32[1,64], index: 5, kind: input, shape index: {}]   ;;  %s1565_s6 = inlined_call_operand.vmem [shape: bf16[32,32], index: 6, kind: input, shape index: {}]   ;;  %s1566_s7 = inlined_call_operand.vmem [shape: f32[1,32], index: 7, kind: input, shape index: {}]   ;;  %s1567_s8 = inlined_call_operand.vmem [shape: f32[8,8], index: 8, kind: input, shape index: {}]   ;;  %s1568_s9 = inlined_call_operand.vmem [shape: f32[1,32], index: 9, kind: input, shape index: {}]   ;;  %s1569_s10 = inlined_call_operand.vmem [shape: f32[1,32], index: 10, kind: input, shape index: {}]   ;;  %s1570_s11 = inlined_call_operand.vmem [shape: f32[2,8,32], index: 11, kind: output, shape index: {}]  }
   0x1 LB: > { %s1163_s18 = sadd.s32 4294967295, %s1342_s17   ;;  %p1167_p0 = scmp.ge.s32.totalorder %s1342_s17, 1  ;;  %s1342_s17 = sphi %s1416_s17, %s21_s17  }
   0x2   : > { %p345_p1 = scmp.lt.s32.totalorder %s1342_s17, 3 }
   0x4   : > { %p346_p2 = pnand %p1167_p0, %p345_p1 }
   0x5   : > { %p387_p3 = scmp.lt.s32.totalorder (!%p346_p2), %s1163_s18, 1  ;;  %s1346_s20 = smov (!%p346_p2), 112  }
   0x6   : > { %349 = sbr.rel (%p346_p2) target bundleno = 1689 (0x699), region = 64  ;;  %s1347_s21 = smov (!%p346_p2), 120  }
   0x7   : > { %s1348_s22 = smov (!%p346_p2), 104   ;;  %s1349_s25 = smov (!%p346_p2), 96  }
   0x8   : > { %s1350_s26 = smov (!%p346_p2), 80   ;;  %s1351_s28 = smov (!%p346_p2), 72  }
   0x9   : > { %s1352_s29 = smov (!%p346_p2), 88   ;;  %s1353_s13 = smov (!%p346_p2), 8  }
   0xa   : > { %s1354_s16 = smov (!%p346_p2), 16  }
   0xb   : > { %v1312_v0 = vld [vmem:[%s1561_s2 + $0x8] sm:$0xff]   ;;  %v1344_v1 = vmov 0.0   ;;  %v1314_v3 = vld [vmem:[%s1561_s2] sm:$0xff]   ;;  %vm1345_vm0 = vmmov 0   ;;  %s1572_s18 = smov (!%p387_p3, %s1163_s18), 1  ;;  %vm426_vm1 = vcmask 261120  }
   0xc   : > { %1220 = vmatprep.subr.bf16.mxu0 %v1344_v1  ;;  %1228 = vmatprep.subr.bf16.mxu1 %v1344_v1  ;;  %v1313_v2 = vld [vmem:[%s1563_s4 + $0x8] sm:$0xff]   ;;  %v1315_v4 = vld [vmem:[%s1563_s4] sm:$0xff]   ;;  %s1444_s27 = sshll.u32 %s1572_s18, 3  ;;  %vm542_vm2 = vcmask 64512   ;;  %vm607_vm3 = vcmask 1043456   ;;  %s1355_s18 = smov 24  }
   0xd   : > { %1221 = vmatpush3.bf16.msra.mxu0 %v1312_v0  ;;  %1224 = vmatprep.mubr.msk.bf16.mxu0 %vm1345_vm0, %v1344_v1  ;;  %s390_s30 = scalar_lea.vmem %s1559_s0, %s1444_s27  ;;  %s394_s14 = scalar_lea.vmem %s1560_s1, %s1444_s27  ;;  %v1171_v9 = vld [vmem:[%s1562_s3] ss:$0 sm:$0xff]  ;;  %vm995_vm4 = vcmask 130048   ;;  %vm997_vm5 = vcmask 195584  }
   0xe   : > { %1229 = vmatpush3.bf16.msra.mxu1 %v1313_v2  ;;  %1222 = vmatprep.subr.bf16.mxu0 %v1344_v1  ;;  %v1451_v5 = vld [vmem:[%s390_s30] sm:$0xff] }
   0xf   : > { %1230 = vmatprep.subr.bf16.mxu1 %v1344_v1  ;;  %1232 = vmatprep.mubr.msk.bf16.mxu1 %vm1345_vm0, %v1344_v1  ;;  %v402_v6 = vpack.c.bf16 %v1451_v5, %v1451_v5  ;;  %v401_v7 = vld [vmem:[%s394_s14] sm:$0xff] }
  0x10   : > { %v471_v8 = vpack.c.bf16 %v401_v7, %v401_v7  ;;  %v1175_v10 = vld [vmem:[%s1564_s5] ss:$0 sm:$0xff] }
  0x11   : > { %1223 = vmatpush3.bf16.msra.mxu0 %v1314_v3  ;;  %v538_v34 = vld [vmem:[%s1567_s8] sm:$0xff] }
  0x12   : > { %1231 = vmatpush3.bf16.msra.mxu1 %v1315_v4  ;;  %1236 = vmatprep.subr.bf16.mxu0 %v1344_v1  ;;  %v539_v35 = vmul.f32 -1e+09, %v538_v34 }
  0x13   : > { %1242 = vmatprep.subr.bf16.mxu1 %v1344_v1 }
  0x14   : > { %1225 = vmatmul.mubr.msk.bf16.vlgmr.msra.gmra.mxu0 %vm426_vm1, %v402_v6 }
  0x15   : > { %1233 = vmatmul.mubr.msk.bf16.vlgmr.msra.gmra.mxu1 %vm426_vm1, %v471_v8  ;;  %1238 = vmatprep.mubr.msk.bf16.mxu0 %vm1345_vm0, %v1344_v1 }
  0x16   : > { %1244 = vmatprep.mubr.msk.bf16.mxu1 %vm1345_vm0, %v1344_v1 }
  0xd4   : > { %v464_v11 = vpop.f32.mrf.mxu0 }
  0xd5   : > { %v465_v12 = vadd.f32 %v1171_v9, %v464_v11  ;;  %v532_v13 = vpop.f32.mrf.mxu1 }
  0xd6   : > { %v533_v14 = vadd.f32 %v1175_v10, %v532_v13  ;;  %v1226_v15 = vpop.f32.mrf.mxu0 }
  0xd7   : > { %v470_v16 = vmul.f32 0.35355338, %v465_v12  ;;  %v1234_v17 = vpop.f32.mrf.mxu1 }
  0xd8   : > { %v1472_v18 = vpack.c.bf16 %v533_v14, %v533_v14  ;;  %v467_v19 = vpop.f32.mrf.mxu0 }
  0xd9   : > { %v535_v20 = vpop.f32.mrf.mxu1  ;;  %v540_v21 = vpack.c.bf16 %v470_v16, %v470_v16 }
  0xda   : > { %764 = vrot.lane.b32.xlu1 %v1472_v18, %s1346_s20  ;;  %654 = vrot.lane.b32.xlu0 %v1472_v18, %s1347_s21  ;;  %v1227_v22 = vpop.f32.mrf.mxu0  ;;  %v547_v23 = vsel %vm542_vm2, %v1472_v18, 0 }
  0xdb   : > { %v1235_v24 = vpop.f32.mrf.mxu1  ;;  %1237 = vmatpush3.bf16.xpose.msra.mxu0 %v547_v23 }
  0xdc   : > { %1248 = vmatprep.subr.bf16.mxu0 %v1344_v1 }
  0xde   : > { %762 = vrot.lane.b32.xlu1 %v540_v21, %s1346_s20  ;;  %652 = vrot.lane.b32.xlu0 %v540_v21, %s1347_s21 }
  0xe2   : > { %872 = vrot.lane.b32.xlu1 %v540_v21, %s1348_s22  ;;  %874 = vrot.lane.b32.xlu0 %v1472_v18, %s1348_s22 }
  0xe3   : > { %1239 = vmatmul.mubr.msk.bf16.vlgmr.msra.gmra.mxu0 %vm542_vm2, %v540_v21 }
  0xe4   : > { %1250 = vmatprep.mubr.msk.bf16.mxu0 %vm1345_vm0, %v1344_v1 }
 0x14c   : > { %v655_v25 = vpop.permute.xlu0 %654  ;;  %v765_v27 = vpop.permute.xlu1 %764 }
 0x14d   : > { %v660_v26 = vsel %vm542_vm2, %v655_v25, 0  ;;  %v770_v29 = vsel %vm542_vm2, %v765_v27, 0 }
 0x14e   : > { %1249 = vmatpush3.bf16.xpose.msra.mxu0 %v660_v26 }
 0x14f   : > { %1260 = vmatprep.subr.bf16.mxu0 %v1344_v1 }
 0x150   : > { %v653_v28 = vpop.permute.xlu0 %652  ;;  %v763_v31 = vpop.permute.xlu1 %762 }
 0x154   : > { %v875_v30 = vpop.permute.xlu0 %874  ;;  %v873_v33 = vpop.permute.xlu1 %872 }
 0x155   : > { %1251 = vmatmul.mubr.msk.bf16.vlgmr.msra.gmra.mxu0 %vm542_vm2, %v653_v28  ;;  %v880_v32 = vsel %vm542_vm2, %v875_v30, 0 }
 0x156   : > { %1261 = vmatpush3.bf16.xpose.msra.mxu0 %v770_v29  ;;  %1262 = vmatprep.mubr.msk.bf16.mxu0 %vm1345_vm0, %v1344_v1 }
 0x157   : > { %1272 = vmatprep.subr.bf16.mxu0 %v1344_v1 }
 0x15d   : > { %1263 = vmatmul.mubr.msk.bf16.vlgmr.msra.gmra.mxu0 %vm542_vm2, %v763_v31 }
 0x15e   : > { %1273 = vmatpush3.bf16.xpose.msra.mxu0 %v880_v32  ;;  %1274 = vmatprep.mubr.msk.bf16.mxu0 %vm1345_vm0, %v1344_v1 }
 0x15f   : > { %1284 = vmatprep.subr.bf16.mxu0 %v1344_v1 }
 0x165   : > { %1275 = vmatmul.mubr.msk.bf16.vlgmr.msra.gmra.mxu0 %vm542_vm2, %v873_v33 }
 0x166   : > { %1288 = vmatprep.mubr.msk.bf16.mxu0 %vm1345_vm0, %v1344_v1 }
 0x1a3   : > { %v583_v36 = vpop.f32.mrf.mxu0 }
 0x1a4   : > { %v584_v37 = vadd.f32 %v583_v36, %v539_v35 }
 0x1a5   : > { %v1240_v38 = vpop.f32.mrf.mxu0 }
 0x1a6   : > { %v589_v39 = vsel %vm542_vm2, %v584_v37, -inf }
 0x1a7   : > { %590 = vmax.xlane.f32.xlu0 %v589_v39  ;;  %v586_v40 = vpop.f32.mrf.mxu0 }
 0x1a9   : > { %v1241_v41 = vpop.f32.mrf.mxu0 }
 0x215   : > { %v696_v42 = vpop.f32.mrf.mxu0 }
 0x216   : > { %v697_v43 = vadd.f32 %v696_v42, %v539_v35 }
 0x217   : > { %v1252_v44 = vpop.f32.mrf.mxu0 }
 0x218   : > { %v702_v45 = vsel %vm542_vm2, %v697_v43, -inf }
 0x219   : > { %703 = vmax.xlane.f32.xlu1 %v702_v45  ;;  %v699_v46 = vpop.f32.mrf.mxu0 }
 0x21a   : > { %v1316_v46 = vld [vmem:[%s1565_s6 + $0x8] sm:$0xff]  }
 0x21b   : > { %v1253_v47 = vpop.f32.mrf.mxu0  ;;  %1285 = vmatpush3.bf16.msra.mxu0 %v1316_v46 }
 0x21c   : > { %1286 = vmatprep.subr.bf16.mxu0 %v1344_v1 }
 0x21d   : > { %v806_v48 = vpop.f32.mrf.mxu0 }
 0x21e   : > { %v807_v49 = vadd.f32 %v806_v48, %v539_v35 }
 0x21f   : > { %v1264_v50 = vpop.f32.mrf.mxu0 }
 0x220   : > { %v812_v51 = vsel %vm542_vm2, %v807_v49, -inf }
 0x221   : > { %813 = vmax.xlane.f32.xlu0 %v812_v51  ;;  %v809_v52 = vpop.f32.mrf.mxu0 }
 0x223   : > { %v1265_v53 = vpop.f32.mrf.mxu0 }
 0x225   : > { %v916_v54 = vpop.f32.mrf.mxu0 }
 0x226   : > { %v917_v55 = vadd.f32 %v916_v54, %v539_v35 }
 0x227   : > { %v1276_v56 = vpop.f32.mrf.mxu0 }
 0x228   : > { %v922_v57 = vsel %vm542_vm2, %v917_v55, -inf }
 0x229   : > { %923 = vmax.xlane.f32.xlu0 %v922_v57  ;;  %v919_v58 = vpop.f32.mrf.mxu0 }
 0x22b   : > { %v1277_v59 = vpop.f32.mrf.mxu0 }
 0x230   : > { %v591_v60 = vpop.xlane.xlu0 %590 }
 0x231   : > { %v592_v61 = vsub.f32 %v584_v37, %v591_v60 }
 0x233   : > { %v593_v62 = vmul.f32 1.442695, %v592_v61 }
 0x235   : > { %1318 = vpow2.f32 %v593_v62 }
 0x242   : > { %v1319_v63 = vpop.eup %1318 }
 0x243   : > { %v595_v0 = vsel %vm542_vm2, %v1319_v63, 0.0 }
 0x244   : > { %596 = vadd.xlane.f32.xlu1 %v595_v0 }
 0x255   : > { %602 = vrot.lane.b32.xlu1 %v1472_v18, %s1349_s25 }
 0x2a2   : > { %v704_v2 = vpop.xlane.xlu1 %703 }
 0x2a3   : > { %v705_v3 = vsub.f32 %v697_v43, %v704_v2 }
 0x2a5   : > { %v706_v4 = vmul.f32 1.442695, %v705_v3  ;;  %v1187_v3 = vld [vmem:[%s1566_s7] ss:$0 sm:$0xff] }
 0x2a7   : > { %1320 = vpow2.f32 %v706_v4 }
 0x2aa   : > { %v814_v6 = vpop.xlane.xlu0 %813 }
 0x2ab   : > { %v815_v7 = vsub.f32 %v807_v49, %v814_v6  ;;  %v1317_v49 = vld [vmem:[%s1565_s6] sm:$0xff]  }
 0x2ac   : > { %1287 = vmatpush3.bf16.msra.mxu0 %v1317_v49 }
 0x2ad   : > { %v816_v8 = vmul.f32 1.442695, %v815_v7 }
 0x2af   : > { %1322 = vpow2.f32 %v816_v8 }
 0x2b2   : > { %v924_v9 = vpop.xlane.xlu0 %923 }
 0x2b3   : > { %v925_v10 = vsub.f32 %v917_v55, %v924_v9 }
 0x2b4   : > { %v1321_v11 = vpop.eup %1320 }
 0x2b5   : > { %v926_v12 = vmul.f32 1.442695, %v925_v10  ;;  %v708_v13 = vsel %vm542_vm2, %v1321_v11, 0.0 }
 0x2b6   : > { %709 = vadd.xlane.f32.xlu0 %v708_v13 }
 0x2b7   : > { %1324 = vpow2.f32 %v926_v12 }
 0x2bc   : > { %v1323_v14 = vpop.eup %1322 }
 0x2bd   : > { %v818_v15 = vsel %vm542_vm2, %v1323_v14, 0.0 }
 0x2be   : > { %819 = vadd.xlane.f32.xlu1 %v818_v15 }
 0x2c4   : > { %v1325_v16 = vpop.eup %1324 }
 0x2c5   : > { %v928_v17 = vsel %vm542_vm2, %v1325_v16, 0.0 }
 0x2c6   : > { %929 = vadd.xlane.f32.xlu0 %v928_v17 }
 0x2cd   : > { %v597_v19 = vpop.xlane.xlu1 %596 }
 0x2ce   : > { %1326 = vrcp.f32 %v597_v19 }
 0x2cf   : > { %824 = vrot.lane.b32.xlu1 %v1472_v18, %s1350_s26 }
 0x2d1   : > { %v603_v20 = vpop.permute.xlu1 %602 }
 0x2d2   : > { %v609_v21 = vsel %vm607_vm3, %v603_v20, 0 }
 0x2d3   : > { %1243 = vmatpush3.bf16.msra.mxu1 %v609_v21  ;;  %934 = vrot.lane.b32.xlu1 %v1472_v18, %s1351_s28  ;;  %s398_s28 = scalar_lea.vmem %s1570_s11, %s1444_s27 }
 0x2d4   : > { %1254 = vmatprep.subr.bf16.mxu1 %v1344_v1 }
 0x2db   : > { %v1327_v22 = vpop.eup %1326 }
 0x2dc   : > { %714 = vrot.lane.b32.xlu0 %v1472_v18, %s1352_s29  ;;  %v599_v23 = vmul.f32 %v1327_v22, %v1319_v63 }
 0x2de   : > { %v600_v24 = vpack.c.bf16 %v599_v23, %v599_v23  ;;  %v1192_v23 = vld [vmem:[%s1569_s10] ss:$0 sm:$0xff] }
 0x2e0   : > { %1245 = vmatmul.mubr.msk.bf16.vlgmr.msra.gmra.mxu1 %vm542_vm2, %v600_v24 }
 0x2e1   : > { %1256 = vmatprep.mubr.msk.bf16.mxu1 %vm1345_vm0, %v1344_v1 }
 0x33f   : > { %v710_v25 = vpop.xlane.xlu0 %709 }
 0x340   : > { %1328 = vrcp.f32 %v710_v25 }
 0x347   : > { %v820_v26 = vpop.xlane.xlu1 %819 }
 0x348   : > { %1330 = vrcp.f32 %v820_v26 }
 0x34b   : > { %v825_v32 = vpop.permute.xlu1 %824 }
 0x34c   : > { %v830_v34 = vsel %vm607_vm3, %v825_v32, 0 }
 0x34d   : > { %v1329_v27 = vpop.eup %1328 }
 0x34e   : > { %v712_v29 = vmul.f32 %v1329_v27, %v1321_v11 }
 0x34f   : > { %v930_v28 = vpop.xlane.xlu0 %929  ;;  %v935_v36 = vpop.permute.xlu1 %934 }
 0x350   : > { %1332 = vrcp.f32 %v930_v28  ;;  %v713_v18 = vpack.c.bf16 %v712_v29, %v712_v29  ;;  %v940_v39 = vsel %vm607_vm3, %v935_v36, 0 }
 0x353   : > { %v715_v30 = vpop.permute.xlu0 %714 }
 0x354   : > { %v720_v31 = vsel %vm607_vm3, %v715_v30, 0 }
 0x355   : > { %1255 = vmatpush3.bf16.msra.mxu1 %v720_v31  ;;  %v1331_v33 = vpop.eup %1330 }
 0x356   : > { %1266 = vmatprep.subr.bf16.mxu1 %v1344_v1  ;;  %v822_v35 = vmul.f32 %v1331_v33, %v1323_v14 }
 0x358   : > { %1257 = vmatmul.mubr.msk.bf16.vlgmr.msra.gmra.mxu1 %vm542_vm2, %v713_v18  ;;  %v823_v37 = vpack.c.bf16 %v822_v35, %v822_v35 }
 0x359   : > { %1267 = vmatpush3.bf16.msra.mxu1 %v830_v34  ;;  %1268 = vmatprep.mubr.msk.bf16.mxu1 %vm1345_vm0, %v1344_v1 }
 0x35a   : > { %1278 = vmatprep.subr.bf16.mxu1 %v1344_v1 }
 0x35d   : > { %v1333_v38 = vpop.eup %1332 }
 0x35e   : > { %v932_v40 = vmul.f32 %v1333_v38, %v1325_v16 }
 0x360   : > { %1269 = vmatmul.mubr.msk.bf16.vlgmr.msra.gmra.mxu1 %vm542_vm2, %v823_v37  ;;  %v933_v41 = vpack.c.bf16 %v932_v40, %v932_v40 }
 0x361   : > { %1279 = vmatpush3.bf16.msra.mxu1 %v940_v39  ;;  %1280 = vmatprep.mubr.msk.bf16.mxu1 %vm1345_vm0, %v1344_v1 }
 0x368   : > { %1281 = vmatmul.mubr.msk.bf16.vlgmr.msra.gmra.mxu1 %vm542_vm2, %v933_v41 }
 0x3a0   : > { %v645_v42 = vpop.f32.mrf.mxu1 }
 0x3a2   : > { %v1246_v43 = vpop.f32.mrf.mxu1 }
 0x3a4   : > { %v648_v44 = vpop.f32.mrf.mxu1 }
 0x3a6   : > { %v1247_v45 = vpop.f32.mrf.mxu1 }
 0x418   : > { %v756_v47 = vpop.f32.mrf.mxu1 }
 0x419   : > { %983 = vrot.lane.b32.xlu0 %v756_v47, %s1353_s13 }
 0x41a   : > { %v1258_v48 = vpop.f32.mrf.mxu1 }
 0x41c   : > { %v759_v50 = vpop.f32.mrf.mxu1 }
 0x41e   : > { %v1259_v51 = vpop.f32.mrf.mxu1 }
 0x420   : > { %v866_v52 = vpop.f32.mrf.mxu1 }
 0x421   : > { %987 = vrot.lane.b32.xlu1 %v866_v52, %s1354_s16 }
 0x422   : > { %v1270_v53 = vpop.f32.mrf.mxu1 }
 0x424   : > { %v869_v54 = vpop.f32.mrf.mxu1 }
 0x426   : > { %v1271_v55 = vpop.f32.mrf.mxu1 }
 0x428   : > { %v976_v56 = vpop.f32.mrf.mxu1 }
 0x429   : > { %991 = vrot.lane.b32.xlu0 %v976_v56, %s1355_s18 }
 0x42a   : > { %v1282_v1 = vpop.f32.mrf.mxu1 }
 0x42c   : > { %v979_v57 = vpop.f32.mrf.mxu1 }
 0x42e   : > { %v1283_v58 = vpop.f32.mrf.mxu1 }
 0x48b   : > { %v984_v59 = vpop.permute.xlu0 %983 }
 0x48c   : > { %v994_v61 = vsel %vm542_vm2, %v645_v42, %v984_v59 }
 0x493   : > { %v988_v60 = vpop.permute.xlu1 %987 }
 0x494   : > { %v996_v62 = vsel %vm995_vm4, %v994_v61, %v988_v60 }
 0x49b   : > { %v992_v63 = vpop.permute.xlu0 %991 }
 0x49c   : > { %v998_v0 = vsel %vm997_vm5, %v996_v62, %v992_v63 }
 0x49d   : > { %v999_v2 = vpack.c.bf16 %v998_v0, %v998_v0 }
 0x49f   : > { %1289 = vmatmul.mubr.msk.bf16.vlgmr.msra.gmra.mxu0 %vm426_vm1, %v999_v2 }
 0x55f   : > { %v1060_v4 = vpop.f32.mrf.mxu0 }
 0x560   : > { %v1061_v6 = vadd.f32 %v1187_v3, %v1060_v4 }
 0x561   : > { %v1290_v7 = vpop.f32.mrf.mxu0 }
 0x562   : > { %v1066_v8 = vadd.f32 %v1061_v6, %v1451_v5  ;;  %v1191_v5 = vld [vmem:[%s1568_s9] ss:$0 sm:$0xff] }
 0x563   : > { %v1063_v9 = vpop.f32.mrf.mxu0 }
 0x564   : > { %v1067_v10 = vsel %vm426_vm1, %v1066_v8, 0.0 }
 0x565   : > { %1068 = vadd.xlane.f32.xlu1 %v1067_v10  ;;  %v1291_v11 = vpop.f32.mrf.mxu0 }
 0x5ee   : > { %v1069_v12 = vpop.xlane.xlu1 %1068 }
 0x5ef   : > { %v1071_v13 = vmul.f32 0.03125, %v1069_v12 }
 0x5f1   : > { %v1072_v14 = vsub.f32 %v1066_v8, %v1071_v13 }
 0x5f3   : > { %v1073_v15 = vmul.f32 %v1072_v14, %v1072_v14 }
 0x5f5   : > { %v1074_v16 = vsel %vm426_vm1, %v1073_v15, 0.0 }
 0x5f6   : > { %1075 = vadd.xlane.f32.xlu0 %v1074_v16 }
 0x67f   : > { %v1076_v17 = vpop.xlane.xlu0 %1075 }
 0x680   : > { %v1077_v19 = vmul.f32 0.03125, %v1076_v17 }
 0x682   : > { %v1078_v20 = vadd.f32 1e-05, %v1077_v19 }
 0x684   : > { %1334 = vrsqrt.f32 %v1078_v20 }
 0x691   : > { %v1335_v21 = vpop.eup %1334 }
 0x692   : > { %v1080_v22 = vmul.f32 %v1335_v21, %v1072_v14 }
 0x694   : > { %v1088_v24 = vmul.f32 %v1191_v5, %v1080_v22 }
 0x696   : > { %v1096_v25 = vadd.f32 %v1192_v23, %v1088_v24 }
 0x698   : > { %1097 = vst.msk [vmem:[%s398_s28] sm:$0xff] %vm426_vm1, %v1096_v25 }
 0x699 PF: > { %s21_s17 = sadd.s32 1, %s1342_s17  }
 0x69a   : > { %p18_p4 = scmp.ge.s32.totalorder %s21_s17, 4  }
 0x69c   :  { %20 = sbr.rel (!%p18_p4) target bundleno = 1 (0x1), region = 97 }

// kernel: decoder_layer_forward.3
= control target key start
LH: loop header
LB: loop body
LE: loop exit
PB: predicated region body
PF: predicated region fallthrough
CT: control target
= control target key end

     0   :  { %15 = vsyncpa [#allocation3], 0  ;;  %s2065_s0 = inlined_call_operand.vmem [shape: f32[2,8,32], index: 0, kind: input, shape index: {}, may-alias: {0,1}]   ;;  %s2066_s1 = inlined_call_operand.vmem [shape: f32[2,8,32], index: 1, kind: input, shape index: {}, may-alias: {0,1}]   ;;  %s2067_s2 = inlined_call_operand.vmem [shape: bf16[32,32], index: 2, kind: input, shape index: {}]   ;;  %s2068_s3 = inlined_call_operand.hbm [shape: f32[1,32], index: 3, kind: input, shape index: {}]   ;;  %s2069_s4 = inlined_call_operand.hbm [shape: bf16[32,64], index: 4, kind: input, shape index: {}]   ;;  %s2070_s5 = inlined_call_operand.hbm [shape: f32[1,64], index: 5, kind: input, shape index: {}]   ;;  %s2071_s6 = inlined_call_operand.hbm [shape: bf16[32,32], index: 6, kind: input, shape index: {}]   ;;  %s2072_s7 = inlined_call_operand.hbm [shape: f32[1,32], index: 7, kind: input, shape index: {}]   ;;  %s2073_s8 = inlined_call_operand.hbm [shape: f32[1,32], index: 8, kind: input, shape index: {}]   ;;  %s2074_s9 = inlined_call_operand.hbm [shape: f32[1,32], index: 9, kind: input, shape index: {}]   ;;  %s2075_s10 = inlined_call_operand.vmem [shape: f32[2,8,32], index: 10, kind: output, shape index: {}]  }
   0x1   :  { %16 = vsyncpa [#allocation5], 0 }
   0x2   :  { %17 = vsyncpa [#allocation8], 0 }
   0x3   :  { %18 = vsyncpa [#allocation11], 0  ;;  %s1843_s13 = smov 0  }
   0x4 LB: > { %s1767_s14 = smov [#allocation4]   ;;  %s1849_s16 = sadd.s32 4294967295, %s1765_s13   ;;  %s1765_s13 = sphi %s1843_s13, %s24_s13  }
   0x5   : > { %s301_s15 = sshll.u32 %s1767_s14, 4  ;;  %p1303_p0 = scmp.ge.s32.totalorder %s1765_s13, 1  ;;  %s302_s15 = int_to_ptr.vmem [resolvable:$true] %s301_s15 }
   0x6   : > { %p275_p1 = scmp.lt.s32.totalorder %s1765_s13, 3  ;;  %p2076_p2 = scmp.eq.s32.totalorder %s1849_s16, 0 }
   0x7   : > { %s1768_s18 = smov [#allocation7]   ;;  %s1769_s21 = smov [#allocation10]  }
   0x8   : > { %p1854_p3 = pnand %p1303_p0, %p275_p1  ;;  %s325_s19 = sshll.u32 %s1768_s18, 4  ;;  %s1860_s19 = int_to_ptr.vmem [resolvable:$true] %s325_s19 }
   0x9   : > { %s350_s22 = sshll.u32 %s1769_s21, 4  ;;  %s1770_s23 = smov [#allocation2]   ;;  %s1868_s22 = int_to_ptr.vmem [resolvable:$true] %s350_s22 }
   0xa   : > { %p1472_p4 = pneg %p1854_p3  ;;  %s1870_s24 = sshll.u32 %s1770_s23, 4  ;;  %s292_s24 = int_to_ptr.vmem [resolvable:$true] %s1870_s24 }
   0xb   : > { %s1572_s26 = scalar_lea.vmem %s302_s15, 256  ;;  %p1580_p10 = scmp.lt.s32.totalorder %s302_s15, %s302_s15 }
   0xc   : > { %p1864_p5 = pnand %p2076_p2, %p1472_p4  ;;  %p1573_p7 = scmp.ne.s32.totalorder %s302_s15, %s1572_s26 }
   0xd   : > { %p1581_p11 = scmp.lt.s32.totalorder %s1572_s26, %s1572_s26 }
   0xe   : > { %p1874_p6 = pneg %p1864_p5 }
   0xf   : > { %p1582_p12 = por %p1581_p11, %p1580_p10 }
  0x10   : > { %p1575_p8 = pnand %p1573_p7, %p1874_p6 }
  0x12   : > { %p1576_p9 = pneg %p1575_p8 }
  0x14   : > { %p1583_p13 = pnand %p1582_p12, %p1576_p9 }
  0x16   : > { %1586 = shalt.err (!%p1583_p13)
}
  0x17   : > { %s1771_s27 = smov 64   ;;  %s1772_s28 = smov 4  }
  0x18   : > { %1478 = dma.hbm_to_vmem [thread:$0]  (!%p1864_p5), %s2069_s4, 256, %s302_s15, [#allocation5], %s1771_s27, %s1771_s27, %s1772_s28  }
  0x19   : > { %s1598_s11 = scalar_lea.vmem %s1860_s19, 256  ;;  %p1606_p7 = scmp.lt.s32.totalorder %s1860_s19, %s1860_s19 }
  0x1a   : > { %p1599_p0 = scmp.ne.s32.totalorder %s1860_s19, %s1598_s11  ;;  %p1607_p8 = scmp.lt.s32.totalorder %s1598_s11, %s1598_s11 }
  0x1c   : > { %p1601_p1 = pnand %p1599_p0, %p1874_p6  ;;  %p1608_p9 = por %p1607_p8, %p1606_p7 }
  0x1e   : > { %p1602_p4 = pneg %p1601_p1 }
  0x20   : > { %p1609_p10 = pnand %p1608_p9, %p1602_p4 }
  0x22   : > { %1612 = shalt.err (!%p1609_p10)
}
  0x23   : > { %1484 = dma.hbm_to_vmem [thread:$0]  (!%p1864_p5), %s2071_s6, 256, %s1860_s19, [#allocation8], %s1771_s27, %s1771_s27, %s1772_s28  }
  0x24   : > { %s1624_s15 = scalar_lea.vmem %s1868_s22, 16  ;;  %s1631_s18 = scalar_lea.vmem %s1868_s22, 32 }
  0x25   : > { %p1625_p11 = scmp.ne.s32.totalorder %s1868_s22, %s1624_s15  ;;  %p1632_p0 = scmp.lt.s32.totalorder %s1868_s22, %s1868_s22 }
  0x26   : > { %p1633_p1 = scmp.lt.s32.totalorder %s1631_s18, %s1624_s15 }
  0x27   : > { %p1627_p12 = pnand %p1625_p11, %p1874_p6 }
  0x28   : > { %p1634_p4 = por %p1633_p1, %p1632_p0 }
  0x29   : > { %p1628_p13 = pneg %p1627_p12 }
  0x2b   : > { %p1635_p7 = pnand %p1634_p4, %p1628_p13 }
  0x2d   : > { %1638 = shalt.err (!%p1635_p7)
}
  0x2e   : > { %1490 = dma.hbm_to_vmem [thread:$0]  (!%p1864_p5), %s2073_s8, 16, %s1868_s22, [#allocation11]  }
  0x2f   : > { %s1650_s19 = scalar_lea.vmem %s292_s24, 16  ;;  %s1657_s26 = scalar_lea.vmem %s292_s24, 32 }
  0x30   : > { %p1651_p8 = scmp.ne.s32.totalorder %s292_s24, %s1650_s19  ;;  %p1658_p11 = scmp.lt.s32.totalorder %s292_s24, %s292_s24 }
  0x31   : > { %p1659_p12 = scmp.lt.s32.totalorder %s1657_s26, %s1650_s19 }
  0x32   : > { %p1653_p9 = pnand %p1651_p8, %p1874_p6 }
  0x33   : > { %p1660_p13 = por %p1659_p12, %p1658_p11 }
  0x34   : > { %p1654_p10 = pneg %p1653_p9 }
  0x36   : > { %p1661_p0 = pnand %p1660_p13, %p1654_p10 }
  0x38   : > { %1664 = shalt.err (!%p1661_p0)
}
  0x39   : > { %1475 = dma.hbm_to_vmem [thread:$0]  (!%p1864_p5), %s2068_s3, 16, %s292_s24, [#allocation3]  }
  0x3a   : > { %s1773_s22 = smov [#allocation6]   ;;  %s1774_s30 = smov [#allocation9]  }
  0x3b   : > { %s315_s29 = sshll.u32 %s1773_s22, 4  ;;  %s339_s11 = sshll.u32 %s1774_s30, 4  ;;  %s316_s29 = int_to_ptr.vmem [resolvable:$true] %s315_s29  ;;  %s340_s11 = int_to_ptr.vmem [resolvable:$true] %s339_s11 }
  0x3c   : > { %s1676_s12 = scalar_lea.vmem %s316_s29, 16  ;;  %s1683_s14 = scalar_lea.vmem %s316_s29, 32 }
  0x3d   : > { %p1677_p1 = scmp.ne.s32.totalorder %s316_s29, %s1676_s12  ;;  %p1684_p8 = scmp.lt.s32.totalorder %s316_s29, %s316_s29 }
  0x3e   : > { %p1685_p9 = scmp.lt.s32.totalorder %s1683_s14, %s1676_s12 }
  0x3f   : > { %p1679_p4 = pnand %p1677_p1, %p1874_p6 }
  0x40   : > { %p1686_p10 = por %p1685_p9, %p1684_p8 }
  0x41   : > { %p1680_p7 = pneg %p1679_p4 }
  0x43   : > { %p1687_p11 = pnand %p1686_p10, %p1680_p7 }
  0x45   : > { %1690 = shalt.err (!%p1687_p11)
}
  0x46   : > { %1481 = dma.hbm_to_vmem [thread:$0]  (!%p1864_p5), %s2070_s5, 16, %s316_s29, [#allocation5]  }
  0x47   : > { %s1702_s18 = scalar_lea.vmem %s340_s11, 16  ;;  %s1709_s21 = scalar_lea.vmem %s340_s11, 32 }
  0x48   : > { %p1703_p12 = scmp.ne.s32.totalorder %s340_s11, %s1702_s18  ;;  %p1710_p1 = scmp.lt.s32.totalorder %s340_s11, %s340_s11 }
  0x49   : > { %p1711_p4 = scmp.lt.s32.totalorder %s1709_s21, %s1702_s18 }
  0x4a   : > { %p1705_p13 = pnand %p1703_p12, %p1874_p6 }
  0x4b   : > { %p1712_p2 = por %p1711_p4, %p1710_p1 }
  0x4c   : > { %p1706_p0 = pneg %p1705_p13 }
  0x4e   : > { %p1713_p8 = pnand %p1712_p2, %p1706_p0 }
  0x50   : > { %1716 = shalt.err (!%p1713_p8)
}
  0x51   : > { %1487 = dma.hbm_to_vmem [thread:$0]  (!%p1864_p5), %s2072_s7, 16, %s340_s11, [#allocation8]  }
  0x52   : > { %s1775_s26 = smov [#allocation12]  }
  0x53   : > { %s361_s27 = sshll.u32 %s1775_s26, 4  ;;  %s362_s27 = int_to_ptr.vmem [resolvable:$true] %s361_s27 }
  0x54   : > { %s1728_s28 = scalar_lea.vmem %s362_s27, 16  ;;  %s1735_s22 = scalar_lea.vmem %s362_s27, 32 }
  0x55   : > { %p1729_p7 = scmp.ne.s32.totalorder %s362_s27, %s1728_s28  ;;  %p1736_p11 = scmp.lt.s32.totalorder %s362_s27, %s362_s27 }
  0x56   : > { %p1737_p12 = scmp.lt.s32.totalorder %s1735_s22, %s1728_s28 }
  0x57   : > { %p1731_p9 = pnand %p1729_p7, %p1874_p6 }
  0x58   : > { %p1738_p2 = por %p1737_p12, %p1736_p11 }
  0x59   : > { %p1732_p10 = pneg %p1731_p9 }
  0x5b   : > { %p1739_p13 = pnand %p1738_p2, %p1732_p10 }
  0x5d   : > { %1742 = shalt.err (!%p1739_p13)
}
  0x5e   : > { %1493 = dma.hbm_to_vmem [thread:$0]  (!%p1864_p5), %s2074_s9, 16, %s362_s27, [#allocation11]  }
  0x5f   : > { %388 = sbr.rel (%p1854_p3) target bundleno = 1788 (0x6fc), region = 60  ;;  %p2080_p0 = scmp.eq.s32.totalorder (!%p1854_p3), %s1849_s16, 0 }
  0x64   : > { %1748 = dma.done.wait (%p2080_p0), [#allocation3], 16   ;;  %p2081_p6 = pmov %p2080_p0 }
  0x65   : > { %p2082_p1 = pmov %p2080_p0 }
  0x66   : > { %1750 = vsyncadd (%p2081_p6), [#allocation3], 4294967280 }
  0x67   : > { %1752 = dma.done.wait (%p2082_p1), [#allocation5], 272   ;;  %p2083_p4 = pmov %p2080_p0 }
  0x68   : > { %p2084_p8 = pmov %p2080_p0 }
  0x69   : > { %1754 = vsyncadd (%p2083_p4), [#allocation5], 4294967024 }
  0x6a   : > { %1756 = dma.done.wait (%p2084_p8), [#allocation8], 272   ;;  %p2085_p5 = pmov %p2080_p0 }
  0x6b   : > { %p2086_p3 = pmov %p2080_p0 }
  0x6c   : > { %1758 = vsyncadd (%p2085_p5), [#allocation8], 4294967024 }
  0x6d   : > { %1760 = dma.done.wait (%p2086_p3), [#allocation11], 32   ;;  %p2087_p7 = pmov %p2080_p0 }
  0x6e   : > { %p452_p9 = scmp.lt.s32.totalorder %s1849_s16, 1  ;;  %v1776_v0 = vmov 0.0   ;;  %vm1777_vm0 = vmmov 0   ;;  %v1537_v1 = vld [vmem:[%s2067_s2 + $0x8] sm:$0xff]   ;;  %v1539_v3 = vld [vmem:[%s2067_s2] sm:$0xff]   ;;  %vm491_vm1 = vcmask 261120   ;;  %v603_v34 = vlaneseq }
  0x6f   : > { %1762 = vsyncadd (%p2087_p7), [#allocation11], 4294967264  ;;  %1372 = vmatprep.subr.bf16.mxu0 %v1776_v0  ;;  %1380 = vmatprep.subr.bf16.mxu1 %v1776_v0  ;;  %v1538_v2 = vld [vmem:[#allocation4 + $0x8] sm:$0xff]   ;;  %v1540_v4 = vld [vmem:[#allocation4] sm:$0xff]   ;;  %vm611_vm2 = vcmask 64512   ;;  %s1779_s19 = smov 120  }
  0x70   : > { %1376 = vmatprep.mubr.msk.bf16.mxu0 %vm1777_vm0, %v1776_v0  ;;  %1384 = vmatprep.mubr.msk.bf16.mxu1 %vm1777_vm0, %v1776_v0  ;;  %s2089_s16 = smov (!%p452_p9, %s1849_s16), 1  ;;  %v1323_v9 = vld [vmem:[#allocation2] ss:$0 sm:$0xff]  ;;  %v1327_v10 = vld [vmem:[#allocation6] ss:$0 sm:$0xff]  ;;  %s1780_s26 = smov 104  }
  0x71   : > { %s1965_s17 = sshll.u32 %s2089_s16, 3  ;;  %1373 = vmatpush3.bf16.msra.mxu0 %v1537_v1  ;;  %1381 = vmatpush3.bf16.msra.mxu1 %v1538_v2  ;;  %s1778_s16 = smov 112   ;;  %v604_v35 = vshrl.u32 %v603_v34, 7  ;;  %v606_v36 = vand.u32 127, %v603_v34  ;;  %vm676_vm4 = vcmask 1043456   ;;  %vm1064_vm5 = vcmask 130048  }
  0x72   : > { %s455_s14 = scalar_lea.vmem %s2065_s0, %s1965_s17  ;;  %s459_s18 = scalar_lea.vmem %s2066_s1, %s1965_s17  ;;  %1374 = vmatprep.subr.bf16.mxu0 %v1776_v0  ;;  %1382 = vmatprep.subr.bf16.mxu1 %v1776_v0  ;;  %vm1066_vm6 = vcmask 195584  }
  0x73   : > { %v1983_v5 = vld [vmem:[%s455_s14] sm:$0xff]  ;;  %vm607_vm3 = vcmp.gt.s32.totalorder %v606_v36, %v604_v35  ;;  %s1781_s27 = smov 96   ;;  %s1782_s28 = smov 80  }
  0x74   : > { %v466_v6 = vld [vmem:[%s459_s18] sm:$0xff]  ;;  %v467_v7 = vpack.c.bf16 %v1983_v5, %v1983_v5  ;;  %v608_v37 = vsel %vm607_vm3, -1e+09, %v1776_v0  ;;  %s1783_s22 = smov 72   ;;  %s1784_s29 = smov 88  }
  0x75   : > { %1375 = vmatpush3.bf16.msra.mxu0 %v1539_v3  ;;  %v536_v8 = vpack.c.bf16 %v466_v6, %v466_v6  ;;  %1383 = vmatpush3.bf16.msra.mxu1 %v1540_v4  ;;  %s1785_s30 = smov 8   ;;  %s1786_s20 = smov 16  }
  0x76   : > { %1388 = vmatprep.subr.bf16.mxu0 %v1776_v0  ;;  %1394 = vmatprep.subr.bf16.mxu1 %v1776_v0  ;;  %s1787_s25 = smov 24   ;;  %s463_s14 = scalar_lea.vmem %s2075_s10, %s1965_s17 }
  0x78   : > { %1377 = vmatmul.mubr.msk.bf16.vlgmr.msra.gmra.mxu0 %vm491_vm1, %v467_v7  ;;  %1385 = vmatmul.mubr.msk.bf16.vlgmr.msra.gmra.mxu1 %vm491_vm1, %v536_v8 }
  0x79   : > { %1390 = vmatprep.mubr.msk.bf16.mxu0 %vm1777_vm0, %v1776_v0  ;;  %1396 = vmatprep.mubr.msk.bf16.mxu1 %vm1777_vm0, %v1776_v0 }
 0x138   : > { %v529_v11 = vpop.f32.mrf.mxu0  ;;  %v597_v13 = vpop.f32.mrf.mxu1 }
 0x139   : > { %v530_v12 = vadd.f32 %v1323_v9, %v529_v11  ;;  %v598_v14 = vadd.f32 %v1327_v10, %v597_v13 }
 0x13a   : > { %v1378_v15 = vpop.f32.mrf.mxu0  ;;  %v1386_v17 = vpop.f32.mrf.mxu1 }
 0x13b   : > { %v535_v16 = vmul.f32 0.35355338, %v530_v12  ;;  %v1995_v18 = vpack.c.bf16 %v598_v14, %v598_v14 }
 0x13c   : > { %v532_v19 = vpop.f32.mrf.mxu0  ;;  %v600_v20 = vpop.f32.mrf.mxu1 }
 0x13d   : > { %v609_v21 = vpack.c.bf16 %v535_v16, %v535_v16  ;;  %833 = vrot.lane.b32.xlu1 %v1995_v18, %s1778_s16  ;;  %723 = vrot.lane.b32.xlu0 %v1995_v18, %s1779_s19  ;;  %v616_v23 = vsel %vm611_vm2, %v1995_v18, 0 }
 0x13e   : > { %v1379_v22 = vpop.f32.mrf.mxu0  ;;  %v1387_v24 = vpop.f32.mrf.mxu1  ;;  %1389 = vmatpush3.bf16.xpose.msra.mxu0 %v616_v23 }
 0x13f   : > { %1400 = vmatprep.subr.bf16.mxu0 %v1776_v0 }
 0x141   : > { %831 = vrot.lane.b32.xlu1 %v609_v21, %s1778_s16  ;;  %721 = vrot.lane.b32.xlu0 %v609_v21, %s1779_s19 }
 0x145   : > { %941 = vrot.lane.b32.xlu1 %v609_v21, %s1780_s26  ;;  %943 = vrot.lane.b32.xlu0 %v1995_v18, %s1780_s26 }
 0x146   : > { %1391 = vmatmul.mubr.msk.bf16.vlgmr.msra.gmra.mxu0 %vm611_vm2, %v609_v21 }
 0x147   : > { %1402 = vmatprep.mubr.msk.bf16.mxu0 %vm1777_vm0, %v1776_v0 }
 0x1af   : > { %v724_v25 = vpop.permute.xlu0 %723  ;;  %v834_v27 = vpop.permute.xlu1 %833 }
 0x1b0   : > { %v729_v26 = vsel %vm611_vm2, %v724_v25, 0  ;;  %v839_v29 = vsel %vm611_vm2, %v834_v27, 0 }
 0x1b1   : > { %1401 = vmatpush3.bf16.xpose.msra.mxu0 %v729_v26 }
 0x1b2   : > { %1412 = vmatprep.subr.bf16.mxu0 %v1776_v0 }
 0x1b3   : > { %v722_v28 = vpop.permute.xlu0 %721  ;;  %v832_v31 = vpop.permute.xlu1 %831 }
 0x1b7   : > { %v944_v30 = vpop.permute.xlu0 %943  ;;  %v942_v33 = vpop.permute.xlu1 %941 }
 0x1b8   : > { %1403 = vmatmul.mubr.msk.bf16.vlgmr.msra.gmra.mxu0 %vm611_vm2, %v722_v28  ;;  %v949_v32 = vsel %vm611_vm2, %v944_v30, 0 }
 0x1b9   : > { %1413 = vmatpush3.bf16.xpose.msra.mxu0 %v839_v29  ;;  %1414 = vmatprep.mubr.msk.bf16.mxu0 %vm1777_vm0, %v1776_v0 }
 0x1ba   : > { %1424 = vmatprep.subr.bf16.mxu0 %v1776_v0 }
 0x1c0   : > { %1415 = vmatmul.mubr.msk.bf16.vlgmr.msra.gmra.mxu0 %vm611_vm2, %v832_v31 }
 0x1c1   : > { %1425 = vmatpush3.bf16.xpose.msra.mxu0 %v949_v32  ;;  %1426 = vmatprep.mubr.msk.bf16.mxu0 %vm1777_vm0, %v1776_v0 }
 0x1c2   : > { %1436 = vmatprep.subr.bf16.mxu0 %v1776_v0 }
 0x1c8   : > { %1427 = vmatmul.mubr.msk.bf16.vlgmr.msra.gmra.mxu0 %vm611_vm2, %v942_v33 }
 0x1c9   : > { %1440 = vmatprep.mubr.msk.bf16.mxu0 %vm1777_vm0, %v1776_v0 }
 0x206   : > { %v652_v38 = vpop.f32.mrf.mxu0 }
 0x207   : > { %v653_v39 = vadd.f32 %v652_v38, %v608_v37 }
 0x208   : > { %v1392_v40 = vpop.f32.mrf.mxu0 }
 0x209   : > { %v658_v41 = vsel %vm611_vm2, %v653_v39, -inf }
 0x20a   : > { %659 = vmax.xlane.f32.xlu0 %v658_v41  ;;  %v655_v42 = vpop.f32.mrf.mxu0 }
 0x20c   : > { %v1393_v43 = vpop.f32.mrf.mxu0 }
 0x278   : > { %v765_v44 = vpop.f32.mrf.mxu0 }
 0x279   : > { %v766_v45 = vadd.f32 %v765_v44, %v608_v37 }
 0x27a   : > { %v1404_v46 = vpop.f32.mrf.mxu0 }
 0x27b   : > { %v771_v47 = vsel %vm611_vm2, %v766_v45, -inf }
 0x27c   : > { %772 = vmax.xlane.f32.xlu1 %v771_v47  ;;  %v768_v48 = vpop.f32.mrf.mxu0 }
 0x27d   : > { %v1541_v48 = vld [vmem:[#allocation7 + $0x8] sm:$0xff]  }
 0x27e   : > { %v1405_v49 = vpop.f32.mrf.mxu0  ;;  %1437 = vmatpush3.bf16.msra.mxu0 %v1541_v48 }
 0x27f   : > { %1438 = vmatprep.subr.bf16.mxu0 %v1776_v0 }
 0x280   : > { %v875_v50 = vpop.f32.mrf.mxu0 }
 0x281   : > { %v876_v51 = vadd.f32 %v875_v50, %v608_v37 }
 0x282   : > { %v1416_v52 = vpop.f32.mrf.mxu0 }
 0x283   : > { %v881_v53 = vsel %vm611_vm2, %v876_v51, -inf }
 0x284   : > { %882 = vmax.xlane.f32.xlu0 %v881_v53  ;;  %v878_v54 = vpop.f32.mrf.mxu0 }
 0x286   : > { %v1417_v55 = vpop.f32.mrf.mxu0 }
 0x288   : > { %v985_v56 = vpop.f32.mrf.mxu0 }
 0x289   : > { %v986_v57 = vadd.f32 %v985_v56, %v608_v37 }
 0x28a   : > { %v1428_v58 = vpop.f32.mrf.mxu0 }
 0x28b   : > { %v991_v59 = vsel %vm611_vm2, %v986_v57, -inf }
 0x28c   : > { %992 = vmax.xlane.f32.xlu0 %v991_v59  ;;  %v988_v60 = vpop.f32.mrf.mxu0 }
 0x28e   : > { %v1429_v61 = vpop.f32.mrf.mxu0 }
 0x293   : > { %v660_v62 = vpop.xlane.xlu0 %659 }
 0x294   : > { %v661_v63 = vsub.f32 %v653_v39, %v660_v62 }
 0x296   : > { %v662_v1 = vmul.f32 1.442695, %v661_v63 }
 0x298   : > { %1543 = vpow2.f32 %v662_v1 }
 0x2a5   : > { %v1544_v2 = vpop.eup %1543 }
 0x2a6   : > { %v664_v3 = vsel %vm611_vm2, %v1544_v2, 0.0 }
 0x2a7   : > { %665 = vadd.xlane.f32.xlu1 %v664_v3 }
 0x2b8   : > { %671 = vrot.lane.b32.xlu1 %v1995_v18, %s1781_s27 }
 0x305   : > { %v773_v4 = vpop.xlane.xlu1 %772 }
 0x306   : > { %v774_v6 = vsub.f32 %v766_v45, %v773_v4 }
 0x308   : > { %v775_v7 = vmul.f32 1.442695, %v774_v6  ;;  %v1339_v6 = vld [vmem:[#allocation9] ss:$0 sm:$0xff] }
 0x30a   : > { %1545 = vpow2.f32 %v775_v7 }
 0x30d   : > { %v883_v8 = vpop.xlane.xlu0 %882 }
 0x30e   : > { %v884_v9 = vsub.f32 %v876_v51, %v883_v8  ;;  %v1542_v51 = vld [vmem:[#allocation7] sm:$0xff]  }
 0x30f   : > { %1439 = vmatpush3.bf16.msra.mxu0 %v1542_v51 }
 0x310   : > { %v885_v10 = vmul.f32 1.442695, %v884_v9 }
 0x312   : > { %1547 = vpow2.f32 %v885_v10 }
 0x315   : > { %v993_v11 = vpop.xlane.xlu0 %992 }
 0x316   : > { %v994_v12 = vsub.f32 %v986_v57, %v993_v11 }
 0x317   : > { %v1546_v13 = vpop.eup %1545 }
 0x318   : > { %v995_v14 = vmul.f32 1.442695, %v994_v12  ;;  %v777_v15 = vsel %vm611_vm2, %v1546_v13, 0.0 }
 0x319   : > { %778 = vadd.xlane.f32.xlu0 %v777_v15 }
 0x31a   : > { %1549 = vpow2.f32 %v995_v14 }
 0x31f   : > { %v1548_v16 = vpop.eup %1547 }
 0x320   : > { %v887_v17 = vsel %vm611_vm2, %v1548_v16, 0.0 }
 0x321   : > { %888 = vadd.xlane.f32.xlu1 %v887_v17 }
 0x327   : > { %v1550_v19 = vpop.eup %1549 }
 0x328   : > { %v997_v20 = vsel %vm611_vm2, %v1550_v19, 0.0 }
 0x329   : > { %998 = vadd.xlane.f32.xlu0 %v997_v20 }
 0x330   : > { %v666_v21 = vpop.xlane.xlu1 %665 }
 0x331   : > { %1551 = vrcp.f32 %v666_v21 }
 0x332   : > { %893 = vrot.lane.b32.xlu1 %v1995_v18, %s1782_s28 }
 0x334   : > { %v672_v22 = vpop.permute.xlu1 %671 }
 0x335   : > { %v678_v23 = vsel %vm676_vm4, %v672_v22, 0 }
 0x336   : > { %1395 = vmatpush3.bf16.msra.mxu1 %v678_v23  ;;  %1003 = vrot.lane.b32.xlu1 %v1995_v18, %s1783_s22 }
 0x337   : > { %1406 = vmatprep.subr.bf16.mxu1 %v1776_v0 }
 0x33e   : > { %v1552_v24 = vpop.eup %1551 }
 0x33f   : > { %783 = vrot.lane.b32.xlu0 %v1995_v18, %s1784_s29  ;;  %v668_v25 = vmul.f32 %v1552_v24, %v1544_v2  ;;  %v1343_v24 = vld [vmem:[#allocation10] ss:$0 sm:$0xff] }
 0x341   : > { %v669_v26 = vpack.c.bf16 %v668_v25, %v668_v25  ;;  %v1344_v25 = vld [vmem:[#allocation12] ss:$0 sm:$0xff] }
 0x343   : > { %1397 = vmatmul.mubr.msk.bf16.vlgmr.msra.gmra.mxu1 %vm611_vm2, %v669_v26 }
 0x344   : > { %1408 = vmatprep.mubr.msk.bf16.mxu1 %vm1777_vm0, %v1776_v0 }
 0x3a2   : > { %v779_v27 = vpop.xlane.xlu0 %778 }
 0x3a3   : > { %1553 = vrcp.f32 %v779_v27 }
 0x3aa   : > { %v889_v28 = vpop.xlane.xlu1 %888 }
 0x3ab   : > { %1555 = vrcp.f32 %v889_v28 }
 0x3ae   : > { %v894_v34 = vpop.permute.xlu1 %893 }
 0x3af   : > { %v899_v36 = vsel %vm676_vm4, %v894_v34, 0 }
 0x3b0   : > { %v1554_v29 = vpop.eup %1553 }
 0x3b1   : > { %v781_v31 = vmul.f32 %v1554_v29, %v1546_v13 }
 0x3b2   : > { %v999_v30 = vpop.xlane.xlu0 %998  ;;  %v1004_v38 = vpop.permute.xlu1 %1003 }
 0x3b3   : > { %1557 = vrcp.f32 %v999_v30  ;;  %v782_v18 = vpack.c.bf16 %v781_v31, %v781_v31  ;;  %v1009_v41 = vsel %vm676_vm4, %v1004_v38, 0 }
 0x3b6   : > { %v784_v32 = vpop.permute.xlu0 %783 }
 0x3b7   : > { %v789_v33 = vsel %vm676_vm4, %v784_v32, 0 }
 0x3b8   : > { %1407 = vmatpush3.bf16.msra.mxu1 %v789_v33  ;;  %v1556_v35 = vpop.eup %1555 }
 0x3b9   : > { %1418 = vmatprep.subr.bf16.mxu1 %v1776_v0  ;;  %v891_v37 = vmul.f32 %v1556_v35, %v1548_v16 }
 0x3bb   : > { %1409 = vmatmul.mubr.msk.bf16.vlgmr.msra.gmra.mxu1 %vm611_vm2, %v782_v18  ;;  %v892_v39 = vpack.c.bf16 %v891_v37, %v891_v37 }
 0x3bc   : > { %1419 = vmatpush3.bf16.msra.mxu1 %v899_v36  ;;  %1420 = vmatprep.mubr.msk.bf16.mxu1 %vm1777_vm0, %v1776_v0 }
 0x3bd   : > { %1430 = vmatprep.subr.bf16.mxu1 %v1776_v0 }
 0x3c0   : > { %v1558_v40 = vpop.eup %1557 }
 0x3c1   : > { %v1001_v42 = vmul.f32 %v1558_v40, %v1550_v19 }
 0x3c3   : > { %1421 = vmatmul.mubr.msk.bf16.vlgmr.msra.gmra.mxu1 %vm611_vm2, %v892_v39  ;;  %v1002_v43 = vpack.c.bf16 %v1001_v42, %v1001_v42 }
 0x3c4   : > { %1431 = vmatpush3.bf16.msra.mxu1 %v1009_v41  ;;  %1432 = vmatprep.mubr.msk.bf16.mxu1 %vm1777_vm0, %v1776_v0 }
 0x3cb   : > { %1433 = vmatmul.mubr.msk.bf16.vlgmr.msra.gmra.mxu1 %vm611_vm2, %v1002_v43 }
 0x403   : > { %v714_v44 = vpop.f32.mrf.mxu1 }
 0x405   : > { %v1398_v45 = vpop.f32.mrf.mxu1 }
 0x407   : > { %v717_v46 = vpop.f32.mrf.mxu1 }
 0x409   : > { %v1399_v47 = vpop.f32.mrf.mxu1 }
 0x47b   : > { %v825_v49 = vpop.f32.mrf.mxu1 }
 0x47c   : > { %1052 = vrot.lane.b32.xlu0 %v825_v49, %s1785_s30 }
 0x47d   : > { %v1410_v50 = vpop.f32.mrf.mxu1 }
 0x47f   : > { %v828_v52 = vpop.f32.mrf.mxu1 }
 0x481   : > { %v1411_v53 = vpop.f32.mrf.mxu1 }
 0x483   : > { %v935_v54 = vpop.f32.mrf.mxu1 }
 0x484   : > { %1056 = vrot.lane.b32.xlu1 %v935_v54, %s1786_s20 }
 0x485   : > { %v1422_v55 = vpop.f32.mrf.mxu1 }
 0x487   : > { %v938_v56 = vpop.f32.mrf.mxu1 }
 0x489   : > { %v1423_v57 = vpop.f32.mrf.mxu1 }
 0x48b   : > { %v1045_v58 = vpop.f32.mrf.mxu1 }
 0x48c   : > { %1060 = vrot.lane.b32.xlu0 %v1045_v58, %s1787_s25 }
 0x48d   : > { %v1434_v59 = vpop.f32.mrf.mxu1 }
 0x48f   : > { %v1048_v60 = vpop.f32.mrf.mxu1 }
 0x491   : > { %v1435_v0 = vpop.f32.mrf.mxu1 }
 0x4ee   : > { %v1053_v61 = vpop.permute.xlu0 %1052 }
 0x4ef   : > { %v1063_v63 = vsel %vm611_vm2, %v714_v44, %v1053_v61 }
 0x4f6   : > { %v1057_v62 = vpop.permute.xlu1 %1056 }
 0x4f7   : > { %v1065_v1 = vsel %vm1064_vm5, %v1063_v63, %v1057_v62 }
 0x4fe   : > { %v1061_v2 = vpop.permute.xlu0 %1060 }
 0x4ff   : > { %v1067_v3 = vsel %vm1066_vm6, %v1065_v1, %v1061_v2 }
 0x500   : > { %v1068_v4 = vpack.c.bf16 %v1067_v3, %v1067_v3 }
 0x502   : > { %1441 = vmatmul.mubr.msk.bf16.vlgmr.msra.gmra.mxu0 %vm491_vm1, %v1068_v4 }
 0x5c2   : > { %v1129_v7 = vpop.f32.mrf.mxu0 }
 0x5c3   : > { %v1130_v8 = vadd.f32 %v1339_v6, %v1129_v7 }
 0x5c4   : > { %v1442_v9 = vpop.f32.mrf.mxu0 }
 0x5c5   : > { %v1135_v10 = vadd.f32 %v1130_v8, %v1983_v5 }
 0x5c6   : > { %v1132_v11 = vpop.f32.mrf.mxu0 }
 0x5c7   : > { %v1136_v12 = vsel %vm491_vm1, %v1135_v10, 0.0 }
 0x5c8   : > { %1137 = vadd.xlane.f32.xlu1 %v1136_v12  ;;  %v1443_v13 = vpop.f32.mrf.mxu0 }
 0x651   : > { %v1138_v14 = vpop.xlane.xlu1 %1137 }
 0x652   : > { %v1140_v15 = vmul.f32 0.03125, %v1138_v14 }
 0x654   : > { %v1141_v16 = vsub.f32 %v1135_v10, %v1140_v15 }
 0x656   : > { %v1142_v17 = vmul.f32 %v1141_v16, %v1141_v16 }
 0x658   : > { %v1143_v19 = vsel %vm491_vm1, %v1142_v17, 0.0 }
 0x659   : > { %1144 = vadd.xlane.f32.xlu0 %v1143_v19 }
 0x6e2   : > { %v1145_v20 = vpop.xlane.xlu0 %1144 }
 0x6e3   : > { %v1146_v21 = vmul.f32 0.03125, %v1145_v20 }
 0x6e5   : > { %v1147_v22 = vadd.f32 1e-05, %v1146_v21 }
 0x6e7   : > { %1559 = vrsqrt.f32 %v1147_v22 }
 0x6f4   : > { %v1560_v23 = vpop.eup %1559 }
 0x6f5   : > { %v1149_v5 = vmul.f32 %v1560_v23, %v1141_v16 }
 0x6f7   : > { %v1157_v26 = vmul.f32 %v1343_v24, %v1149_v5 }
 0x6f9   : > { %v1165_v27 = vadd.f32 %v1344_v25, %v1157_v26 }
 0x6fb   : > { %1166 = vst.msk [vmem:[%s463_s14] sm:$0xff] %vm491_vm1, %v1165_v27 }
 0x6fc PF: > { %s24_s13 = sadd.s32 1, %s1765_s13  }
 0x6fd   : > { %p21_p10 = scmp.ge.s32.totalorder %s24_s13, 4  }
 0x6ff   :  { %23 = sbr.rel (!%p21_p10) target bundleno = 4 (0x4), region = 122 }
 0x704   :  { %1186 = vsyncpa [#allocation3], 1 }
 0x705   :  { %1188 = vsyncpa [#allocation3 + $0x1], 1 }
 0x706   :  { %1189 = vsyncpa [#allocation5], 1 }
 0x707   :  { %1190 = vsyncpa [#allocation8], 1 }
 0x708   :  { %1191 = vsyncpa [#allocation11], 1 }

</bundles_post_ra>
